<compile_context>
chip_gen: v5e
topology: v5e:2x2
jax: 0.10.0
libtpu: 0.0.40
codegen_flags: <defaults>
</compile_context>

<pallas_src>
import numpy as np
import jax
import jax.numpy as jnp
from jax.experimental import pallas as pl
from jax.experimental.pallas import tpu as pltpu

LN_EPS = 1e-5    # PyTorch LayerNorm / TransformerEncoderLayer default
SUBLANE = 8      # pad batch to a multiple of 8 sublanes
LANE = 128       # pad the narrow fc3 output to a full 128-lane store
MAX_TB = 256     # rows per grid step for large batches


# ----------------------------- kernel helpers ------------------------------

def _erf(x):
    # Abramowitz & Stegun 7.1.26, |error| <= 1.5e-7.  Uses only ops with
    # guaranteed Mosaic lowering (exp -> EUP, mul/add/select -> VPU).
    p = 0.3275911
    a1, a2, a3, a4, a5 = (0.254829592, -0.284496736, 1.421413741,
                          -1.453152027, 1.061405429)
    sgn = jnp.where(x >= 0.0, 1.0, -1.0)
    ax = jnp.abs(x)
    t = 1.0 / (1.0 + p * ax)
    poly = ((((a5 * t + a4) * t + a3) * t + a2) * t + a1) * t
    return sgn * (1.0 - poly * jnp.exp(-(ax * ax)))


def _gelu(x):
    # exact (erf) GELU == torch.nn.GELU(approximate='none') / F.gelu default
    return 0.5 * x * (1.0 + _erf(x * 0.7071067811865476))


def _layernorm(x, gamma, beta):
    mu = jnp.mean(x, axis=-1, keepdims=True)
    var = jnp.mean(jnp.square(x - mu), axis=-1, keepdims=True)
    return (x - mu) * jax.lax.rsqrt(var + LN_EPS) * gamma + beta


def _dot(x, w):
    # bf16 MXU inputs, f32 accumulation; elementwise math stays f32.
    return jnp.dot(x.astype(jnp.bfloat16), w,
                   preferred_element_type=jnp.float32)


# ------------------------------ fused kernel --------------------------------

def make_fused_kernel(num_layers):
    def kernel(*refs):
        (x_ref,
         e1w, e1b, ln1g, ln1b,
         e2w, e2b, ln2g, ln2b, pe0,
         lvw, lvb, low, lob, lg1, lb1, lf1w, lf1b, lf2w, lf2b, lg2, lb2,
         avw, avb, aow, aob,
         fc1w, fc1b, fc2w, fc2b, ln3g, ln3b,
         fc3w, fc3b,
         o_ref) = refs

        x = x_ref[...]
        # embedding_fc1 -> norm1 -> gelu        (dropout == identity in eval)
        h = _gelu(_layernorm(_dot(x, e1w[...]) + e1b[...],
                             ln1g[...], ln1b[...]))
        # embedding_fc2 -> norm2 -> gelu -> + positional encoding at pos 0
        xp = _gelu(_layernorm(_dot(h, e2w[...]) + e2b[...],
                              ln2g[...], ln2b[...])) + pe0[...]

        # post-norm TransformerEncoder stack (seq_len == 1):
        #   attn = out_proj(v_proj(t));  h = LN1(t + attn)
        #   ff   = W2 @ gelu(W1 @ h + b1) + b2;  t = LN2(h + ff)
        t = xp
        for l in range(num_layers):     # small L -> static unroll
            v = _dot(t, lvw[l]) + lvb[l]
            attn = _dot(v, low[l]) + lob[l]
            hh = _layernorm(t + attn, lg1[l], lb1[l])
            ff = _gelu(_dot(hh, lf1w[l]) + lf1b[l])
            ff = _dot(ff, lf2w[l]) + lf2b[l]
            t = _layernorm(hh + ff, lg2[l], lb2[l])

        # x = xp + transformer_out ; x = x + MHA(x, x, x)   (seq_len == 1)
        x2 = xp + t
        x3 = x2 + (_dot(_dot(x2, avw[...]) + avb[...], aow[...]) + aob[...])

        # fc1 -> norm2 -> gelu -> + residual (shapes match)
        y = _gelu(_layernorm(_dot(x3, fc1w[...]) + fc1b[...],
                             ln2g[...], ln2b[...])) + x3
        # fc2 -> norm3 -> gelu               (shapes differ -> no residual)
        z = _gelu(_layernorm(_dot(y, fc2w[...]) + fc2b[...],
                             ln3g[...], ln3b[...]))
        # fc3 (weights zero-padded to 128 output lanes for a dense store)
        o_ref[...] = _dot(z, fc3w[...]) + fc3b[...]

    return kernel


# --------------------------- pallas_call wrapper ----------------------------

@jax.jit
def imputation_forward(x, p):
    B, in_dim = x.shape
    if B <= MAX_TB:
        TB = ((B + SUBLANE - 1) // SUBLANE) * SUBLANE
    else:
        TB = MAX_TB
    Bp = ((B + TB - 1) // TB) * TB
    x_pad = jnp.zeros((Bp, in_dim), jnp.float32).at[:B].set(x)

    L = len(p["layers"])
    bf16 = lambda w: w.astype(jnp.bfloat16)

    # Stack per-layer transformer weights: one contiguous weight stream.
    (lvw, lvb, low, lob, lg1, lb1,
     lf1w, lf1b, lf2w, lf2b, lg2, lb2) = [jnp.stack(ws) for ws in zip(*p["layers"])]

    # Pad fc3 to 128 output lanes (lane-dense store); sliced back below.
    h2 = p["fc3_w"].shape[0]
    fc3w = jnp.zeros((h2, LANE), jnp.float32).at[:, :3].set(p["fc3_w"])
    fc3b = jnp.zeros((1, LANE), jnp.float32).at[:, :3].set(p["fc3_b"])

    args = (
        x_pad,
        bf16(p["e1_w"]), p["e1_b"], p["ln1_g"], p["ln1_b"],
        bf16(p["e2_w"]), p["e2_b"], p["ln2_g"], p["ln2_b"], p["pe0"],
        bf16(lvw), lvb, bf16(low), lob, lg1, lb1,
        bf16(lf1w), lf1b, bf16(lf2w), lf2b, lg2, lb2,
        bf16(p["attn_vw"]), p["attn_vb"], bf16(p["attn_ow"]), p["attn_ob"],
        bf16(p["fc1_w"]), p["fc1_b"], bf16(p["fc2_w"]), p["fc2_b"],
        p["ln3_g"], p["ln3_b"],
        bf16(fc3w), fc3b,
    )

    vmem_full = pl.BlockSpec(memory_space=pltpu.MemorySpace.VMEM)
    out = pl.pallas_call(
        make_fused_kernel(L),
        out_shape=jax.ShapeDtypeStruct((Bp, LANE), jnp.float32),
        grid=(Bp // TB,),
        in_specs=[pl.BlockSpec((TB, in_dim), lambda i: (i, 0))]
                 + [vmem_full] * (len(args) - 1),
        out_specs=pl.BlockSpec((TB, LANE), lambda i: (i, 0)),
        compiler_params=pltpu.CompilerParams(
            dimension_semantics=("parallel",)),
    )(*args)
    return out[:B, :3]


# ------------------------------ parameters ----------------------------------

def _linear(key, fan_in, fan_out):
    kw, kb = jax.random.split(key)
    lim = float(np.sqrt(6.0 / (fan_in + fan_out)))          # xavier_uniform_
    w = jax.random.uniform(kw, (fan_in, fan_out), jnp.float32, -lim, lim)
    b = jax.random.uniform(kb, (1, fan_out), jnp.float32, -0.05, 0.05)
    return w, b


def _ln_params(dim):
    return jnp.ones((1, dim), jnp.float32), jnp.zeros((1, dim), jnp.float32)


def init_params(key, input_size, hidden, num_layers):
    keys = jax.random.split(key, 8 + num_layers)
    p = {}
    p["e1_w"], p["e1_b"] = _linear(keys[0], input_size, hidden)
    p["e2_w"], p["e2_b"] = _linear(keys[1], hidden, hidden)
    p["ln1_g"], p["ln1_b"] = _ln_params(hidden)
    p["ln2_g"], p["ln2_b"] = _ln_params(hidden)
    p["ln3_g"], p["ln3_b"] = _ln_params(hidden // 2)
    # positional encoding at position 0: even dims sin(0)=0, odd dims cos(0)=1
    pe0 = np.zeros((1, hidden), np.float32)
    pe0[0, 1::2] = 1.0
    p["pe0"] = jnp.asarray(pe0)

    layers = []
    for l in range(num_layers):
        lk = jax.random.split(keys[2 + l], 4)
        vw, vb = _linear(lk[0], hidden, hidden)      # value projection
        ow, ob = _linear(lk[1], hidden, hidden)      # attention out_proj
        g1, b1 = _ln_params(hidden)
        f1w, f1b = _linear(lk[2], hidden, 4 * hidden)
        f2w, f2b = _linear(lk[3], 4 * hidden, hidden)
        g2, b2 = _ln_params(hidden)
        layers.append((vw, vb, ow, ob, g1, b1, f1w, f1b, f2w, f2b, g2, b2))
    p["layers"] = layers

    ka = jax.random.split(keys[2 + num_layers], 2)
    p["attn_vw"], p["attn_vb"] = _linear(ka[0], hidden, hidden)
    p["attn_ow"], p["attn_ob"] = _linear(ka[1], hidden, hidden)
    p["fc1_w"], p["fc1_b"] = _linear(keys[3 + num_layers], hidden, hidden)
    p["fc2_w"], p["fc2_b"] = _linear(keys[4 + num_layers], hidden, hidden // 2)
    p["fc3_w"], p["fc3_b"] = _linear(keys[5 + num_layers], hidden // 2, 3)
    return p


# -------------------------- pure-JAX reference -------------------------------

def reference_forward(x, p, matmul_dtype=jnp.float32):
    """Model semantics in plain JAX.  matmul_dtype=bfloat16 mirrors the
    kernel's mixed-precision matmuls (f32 accumulation)."""
    def mm(a, w):
        return jnp.dot(a.astype(matmul_dtype), w.astype(matmul_dtype),
                       preferred_element_type=jnp.float32)

    def ln(v, g, b):
        mu = v.mean(-1, keepdims=True)
        var = ((v - mu) ** 2).mean(-1, keepdims=True)
        return (v - mu) * jax.lax.rsqrt(var + LN_EPS) * g + b

    gelu = lambda v: jax.nn.gelu(v, approximate=False)

    h = gelu(ln(mm(x, p["e1_w"]) + p["e1_b"], p["ln1_g"], p["ln1_b"]))
    xp = gelu(ln(mm(h, p["e2_w"]) + p["e2_b"], p["ln2_g"], p["ln2_b"])) + p["pe0"]
    t = xp
    for (vw, vb, ow, ob, g1, b1, f1w, f1b, f2w, f2b, g2, b2) in p["layers"]:
        attn = mm(mm(t, vw) + vb, ow) + ob
        hh = ln(t + attn, g1, b1)
        ff = mm(gelu(mm(hh, f1w) + f1b), f2w) + f2b
        t = ln(hh + ff, g2, b2)
    x2 = xp + t
    x3 = x2 + (mm(mm(x2, p["attn_vw"]) + p["attn_vb"], p["attn_ow"]) + p["attn_ob"])
    y = gelu(ln(mm(x3, p["fc1_w"]) + p["fc1_b"], p["ln2_g"], p["ln2_b"])) + x3
    z = gelu(ln(mm(y, p["fc2_w"]) + p["fc2_b"], p["ln3_g"], p["ln3_b"]))
    return mm(z, p["fc3_w"]) + p["fc3_b"]


# --------------------------------- main --------------------------------------

if __name__ == "__main__":
    # Small shapes consistent with the module: batch=4, input_size=16,
    # hidden_size=64, nhead=8 (nhead has no effect for seq_len == 1),
    # num_layers=2, output dim 3.
    B, INPUT_SIZE, HIDDEN, NUM_LAYERS = 4, 16, 64, 2
    key = jax.random.PRNGKey(0)
    kx, kp = jax.random.split(key)
    x = jax.random.normal(kx, (B, INPUT_SIZE), jnp.float32)
    params = init_params(kp, INPUT_SIZE, HIDDEN, NUM_LAYERS)

    out = jax.block_until_ready(imputation_forward(x, params))
    assert out.shape == (B, 3)

    # Strict structural check: reference mirroring the kernel's mixed precision.
    ref_mixed = jax.block_until_ready(
        reference_forward(x, params, matmul_dtype=jnp.bfloat16))
    np.testing.assert_allclose(np.asarray(out), np.asarray(ref_mixed),
                               rtol=2e-2, atol=2e-2)

    # Sanity check against full-f32 model semantics (bf16 matmul precision loss
    # only; any structural bug would produce O(1) differences).
    ref_f32 = jax.block_until_ready(
        reference_forward(x, params, matmul_dtype=jnp.float32))
    np.testing.assert_allclose(np.asarray(out), np.asarray(ref_f32),
                               rtol=2.5e-1, atol=2.5e-1)

    print("KERNEL_OK")
</pallas_src>

<mosaic_0001>
module attributes {stable_mosaic.version = 11 : i64} {
  func.func @kernel(%arg0: i32, %arg1: memref<8x16xf32, #tpu.memory_space<vmem>>, %arg2: memref<16x64xbf16, #tpu.memory_space<vmem>>, %arg3: memref<1x64xf32, #tpu.memory_space<vmem>>, %arg4: memref<1x64xf32, #tpu.memory_space<vmem>>, %arg5: memref<1x64xf32, #tpu.memory_space<vmem>>, %arg6: memref<64x64xbf16, #tpu.memory_space<vmem>>, %arg7: memref<1x64xf32, #tpu.memory_space<vmem>>, %arg8: memref<1x64xf32, #tpu.memory_space<vmem>>, %arg9: memref<1x64xf32, #tpu.memory_space<vmem>>, %arg10: memref<1x64xf32, #tpu.memory_space<vmem>>, %arg11: memref<2x64x64xbf16, #tpu.memory_space<vmem>>, %arg12: memref<2x1x64xf32, #tpu.memory_space<vmem>>, %arg13: memref<2x64x64xbf16, #tpu.memory_space<vmem>>, %arg14: memref<2x1x64xf32, #tpu.memory_space<vmem>>, %arg15: memref<2x1x64xf32, #tpu.memory_space<vmem>>, %arg16: memref<2x1x64xf32, #tpu.memory_space<vmem>>, %arg17: memref<2x64x256xbf16, #tpu.memory_space<vmem>>, %arg18: memref<2x1x256xf32, #tpu.memory_space<vmem>>, %arg19: memref<2x256x64xbf16, #tpu.memory_space<vmem>>, %arg20: memref<2x1x64xf32, #tpu.memory_space<vmem>>, %arg21: memref<2x1x64xf32, #tpu.memory_space<vmem>>, %arg22: memref<2x1x64xf32, #tpu.memory_space<vmem>>, %arg23: memref<64x64xbf16, #tpu.memory_space<vmem>>, %arg24: memref<1x64xf32, #tpu.memory_space<vmem>>, %arg25: memref<64x64xbf16, #tpu.memory_space<vmem>>, %arg26: memref<1x64xf32, #tpu.memory_space<vmem>>, %arg27: memref<64x64xbf16, #tpu.memory_space<vmem>>, %arg28: memref<1x64xf32, #tpu.memory_space<vmem>>, %arg29: memref<64x32xbf16, #tpu.memory_space<vmem>>, %arg30: memref<1x32xf32, #tpu.memory_space<vmem>>, %arg31: memref<1x32xf32, #tpu.memory_space<vmem>>, %arg32: memref<1x32xf32, #tpu.memory_space<vmem>>, %arg33: memref<32x128xbf16, #tpu.memory_space<vmem>>, %arg34: memref<1x128xf32, #tpu.memory_space<vmem>>, %arg35: memref<8x128xf32, #tpu.memory_space<vmem>>) attributes {dimension_semantics = [#tpu.dimension_semantics<parallel>], iteration_bounds = array<i64: 1>, scalar_prefetch = 0 : i64, scratch_operands = 0 : i64, tpu.core_type = #tpu.core_type<tc>, window_params = [{transform_indices = @transform_0, window_bounds = array<i64: 8, 16>}, {pipeline_mode = #tpu.pipeline_mode<synchronous>, transform_indices = @transform_1, window_bounds = array<i64: 16, 64>}, {pipeline_mode = #tpu.pipeline_mode<synchronous>, transform_indices = @transform_2, window_bounds = array<i64: 1, 64>}, {pipeline_mode = #tpu.pipeline_mode<synchronous>, transform_indices = @transform_3, window_bounds = array<i64: 1, 64>}, {pipeline_mode = #tpu.pipeline_mode<synchronous>, transform_indices = @transform_4, window_bounds = array<i64: 1, 64>}, {pipeline_mode = #tpu.pipeline_mode<synchronous>, transform_indices = @transform_5, window_bounds = array<i64: 64, 64>}, {pipeline_mode = #tpu.pipeline_mode<synchronous>, transform_indices = @transform_6, window_bounds = array<i64: 1, 64>}, {pipeline_mode = #tpu.pipeline_mode<synchronous>, transform_indices = @transform_7, window_bounds = array<i64: 1, 64>}, {pipeline_mode = #tpu.pipeline_mode<synchronous>, transform_indices = @transform_8, window_bounds = array<i64: 1, 64>}, {pipeline_mode = #tpu.pipeline_mode<synchronous>, transform_indices = @transform_9, window_bounds = array<i64: 1, 64>}, {pipeline_mode = #tpu.pipeline_mode<synchronous>, transform_indices = @transform_10, window_bounds = array<i64: 2, 64, 64>}, {pipeline_mode = #tpu.pipeline_mode<synchronous>, transform_indices = @transform_11, window_bounds = array<i64: 2, 1, 64>}, {pipeline_mode = #tpu.pipeline_mode<synchronous>, transform_indices = @transform_12, window_bounds = array<i64: 2, 64, 64>}, {pipeline_mode = #tpu.pipeline_mode<synchronous>, transform_indices = @transform_13, window_bounds = array<i64: 2, 1, 64>}, {pipeline_mode = #tpu.pipeline_mode<synchronous>, transform_indices = @transform_14, window_bounds = array<i64: 2, 1, 64>}, {pipeline_mode = #tpu.pipeline_mode<synchronous>, transform_indices = @transform_15, window_bounds = array<i64: 2, 1, 64>}, {pipeline_mode = #tpu.pipeline_mode<synchronous>, transform_indices = @transform_16, window_bounds = array<i64: 2, 64, 256>}, {pipeline_mode = #tpu.pipeline_mode<synchronous>, transform_indices = @transform_17, window_bounds = array<i64: 2, 1, 256>}, {pipeline_mode = #tpu.pipeline_mode<synchronous>, transform_indices = @transform_18, window_bounds = array<i64: 2, 256, 64>}, {pipeline_mode = #tpu.pipeline_mode<synchronous>, transform_indices = @transform_19, window_bounds = array<i64: 2, 1, 64>}, {pipeline_mode = #tpu.pipeline_mode<synchronous>, transform_indices = @transform_20, window_bounds = array<i64: 2, 1, 64>}, {pipeline_mode = #tpu.pipeline_mode<synchronous>, transform_indices = @transform_21, window_bounds = array<i64: 2, 1, 64>}, {pipeline_mode = #tpu.pipeline_mode<synchronous>, transform_indices = @transform_22, window_bounds = array<i64: 64, 64>}, {pipeline_mode = #tpu.pipeline_mode<synchronous>, transform_indices = @transform_23, window_bounds = array<i64: 1, 64>}, {pipeline_mode = #tpu.pipeline_mode<synchronous>, transform_indices = @transform_24, window_bounds = array<i64: 64, 64>}, {pipeline_mode = #tpu.pipeline_mode<synchronous>, transform_indices = @transform_25, window_bounds = array<i64: 1, 64>}, {pipeline_mode = #tpu.pipeline_mode<synchronous>, transform_indices = @transform_26, window_bounds = array<i64: 64, 64>}, {pipeline_mode = #tpu.pipeline_mode<synchronous>, transform_indices = @transform_27, window_bounds = array<i64: 1, 64>}, {pipeline_mode = #tpu.pipeline_mode<synchronous>, transform_indices = @transform_28, window_bounds = array<i64: 64, 32>}, {pipeline_mode = #tpu.pipeline_mode<synchronous>, transform_indices = @transform_29, window_bounds = array<i64: 1, 32>}, {pipeline_mode = #tpu.pipeline_mode<synchronous>, transform_indices = @transform_30, window_bounds = array<i64: 1, 32>}, {pipeline_mode = #tpu.pipeline_mode<synchronous>, transform_indices = @transform_31, window_bounds = array<i64: 1, 32>}, {pipeline_mode = #tpu.pipeline_mode<synchronous>, transform_indices = @transform_32, window_bounds = array<i64: 32, 128>}, {pipeline_mode = #tpu.pipeline_mode<synchronous>, transform_indices = @transform_33, window_bounds = array<i64: 1, 128>}, {transform_indices = @transform_34, window_bounds = array<i64: 8, 128>}]} {
    %c0 = arith.constant 0 : index
    %c0_0 = arith.constant 0 : index
    %0 = vector.load %arg1[%c0, %c0_0] : memref<8x16xf32, #tpu.memory_space<vmem>>, vector<8x16xf32>
    %c0_1 = arith.constant 0 : index
    %c0_2 = arith.constant 0 : index
    %1 = vector.load %arg2[%c0_1, %c0_2] : memref<16x64xbf16, #tpu.memory_space<vmem>>, vector<16x64xbf16>
    %2 = arith.truncf %0 : vector<8x16xf32> to vector<8x16xbf16>
    %cst = arith.constant dense<0.000000e+00> : vector<8x64xf32>
    %3 = tpu.matmul %2, %1, %cst {dimension_numbers = #tpu.dot_dimension_numbers<[1], [0], [0], [1], [0, 0, 1, 1], [], []>} : vector<8x16xbf16>, vector<16x64xbf16>, vector<8x64xf32> -> vector<8x64xf32>
    %c0_3 = arith.constant 0 : index
    %c0_4 = arith.constant 0 : index
    %4 = vector.load %arg3[%c0_3, %c0_4] : memref<1x64xf32, #tpu.memory_space<vmem>>, vector<1x64xf32>
    %5 = vector.broadcast %4 : vector<1x64xf32> to vector<8x64xf32>
    %6 = arith.addf %3, %5 : vector<8x64xf32>
    %c0_5 = arith.constant 0 : index
    %c0_6 = arith.constant 0 : index
    %7 = vector.load %arg4[%c0_5, %c0_6] : memref<1x64xf32, #tpu.memory_space<vmem>>, vector<1x64xf32>
    %c0_7 = arith.constant 0 : index
    %c0_8 = arith.constant 0 : index
    %8 = vector.load %arg5[%c0_7, %c0_8] : memref<1x64xf32, #tpu.memory_space<vmem>>, vector<1x64xf32>
    %cst_9 = arith.constant dense<0.000000e+00> : vector<8xf32>
    %9 = vector.multi_reduction <add>, %6, %cst_9 [1] : vector<8x64xf32> to vector<8xf32>
    %10 = vector.shape_cast %9 : vector<8xf32> to vector<8x1xf32>
    %cst_10 = arith.constant 6.400000e+01 : f32
    %11 = vector.broadcast %cst_10 : f32 to vector<8x1xf32>
    %12 = arith.divf %10, %11 : vector<8x1xf32>
    %13 = vector.broadcast %12 : vector<8x1xf32> to vector<8x64xf32>
    %14 = arith.subf %6, %13 : vector<8x64xf32>
    %15 = arith.mulf %14, %14 : vector<8x64xf32>
    %cst_11 = arith.constant dense<0.000000e+00> : vector<8xf32>
    %16 = vector.multi_reduction <add>, %15, %cst_11 [1] : vector<8x64xf32> to vector<8xf32>
    %17 = vector.shape_cast %16 : vector<8xf32> to vector<8x1xf32>
    %cst_12 = arith.constant 6.400000e+01 : f32
    %18 = vector.broadcast %cst_12 : f32 to vector<8x1xf32>
    %19 = arith.divf %17, %18 : vector<8x1xf32>
    %20 = vector.broadcast %12 : vector<8x1xf32> to vector<8x64xf32>
    %21 = arith.subf %6, %20 : vector<8x64xf32>
    %cst_13 = arith.constant 9.99999974E-6 : f32
    %22 = vector.broadcast %cst_13 : f32 to vector<8x1xf32>
    %23 = arith.addf %19, %22 : vector<8x1xf32>
    %24 = math.rsqrt %23 : vector<8x1xf32>
    %25 = vector.broadcast %24 : vector<8x1xf32> to vector<8x64xf32>
    %26 = arith.mulf %21, %25 : vector<8x64xf32>
    %27 = vector.broadcast %7 : vector<1x64xf32> to vector<8x64xf32>
    %28 = arith.mulf %26, %27 : vector<8x64xf32>
    %29 = vector.broadcast %8 : vector<1x64xf32> to vector<8x64xf32>
    %30 = arith.addf %28, %29 : vector<8x64xf32>
    %cst_14 = arith.constant 5.000000e-01 : f32
    %31 = vector.broadcast %cst_14 : f32 to vector<8x64xf32>
    %32 = arith.mulf %31, %30 : vector<8x64xf32>
    %cst_15 = arith.constant 0.707106769 : f32
    %33 = vector.broadcast %cst_15 : f32 to vector<8x64xf32>
    %34 = arith.mulf %30, %33 : vector<8x64xf32>
    %cst_16 = arith.constant 0.000000e+00 : f32
    %35 = vector.broadcast %cst_16 : f32 to vector<8x64xf32>
    %36 = arith.cmpf oge, %34, %35 : vector<8x64xf32>
    %cst_17 = arith.constant 1.000000e+00 : f32
    %cst_18 = arith.constant -1.000000e+00 : f32
    %37 = vector.broadcast %cst_17 : f32 to vector<8x64xf32>
    %38 = vector.broadcast %cst_18 : f32 to vector<8x64xf32>
    %39 = arith.select %36, %37, %38 : vector<8x64xi1>, vector<8x64xf32>
    %40 = math.absf %34 : vector<8x64xf32>
    %cst_19 = arith.constant 0.327591091 : f32
    %41 = vector.broadcast %cst_19 : f32 to vector<8x64xf32>
    %42 = arith.mulf %41, %40 : vector<8x64xf32>
    %cst_20 = arith.constant 1.000000e+00 : f32
    %43 = vector.broadcast %cst_20 : f32 to vector<8x64xf32>
    %44 = arith.addf %43, %42 : vector<8x64xf32>
    %cst_21 = arith.constant 1.000000e+00 : f32
    %45 = vector.broadcast %cst_21 : f32 to vector<8x64xf32>
    %46 = arith.divf %45, %44 : vector<8x64xf32>
    %cst_22 = arith.constant 1.06140542 : f32
    %47 = vector.broadcast %cst_22 : f32 to vector<8x64xf32>
    %48 = arith.mulf %47, %46 : vector<8x64xf32>
    %cst_23 = arith.constant -1.45315206 : f32
    %49 = vector.broadcast %cst_23 : f32 to vector<8x64xf32>
    %50 = arith.addf %48, %49 : vector<8x64xf32>
    %51 = arith.mulf %50, %46 : vector<8x64xf32>
    %cst_24 = arith.constant 1.42141378 : f32
    %52 = vector.broadcast %cst_24 : f32 to vector<8x64xf32>
    %53 = arith.addf %51, %52 : vector<8x64xf32>
    %54 = arith.mulf %53, %46 : vector<8x64xf32>
    %cst_25 = arith.constant -0.284496725 : f32
    %55 = vector.broadcast %cst_25 : f32 to vector<8x64xf32>
    %56 = arith.addf %54, %55 : vector<8x64xf32>
    %57 = arith.mulf %56, %46 : vector<8x64xf32>
    %cst_26 = arith.constant 0.254829586 : f32
    %58 = vector.broadcast %cst_26 : f32 to vector<8x64xf32>
    %59 = arith.addf %57, %58 : vector<8x64xf32>
    %60 = arith.mulf %59, %46 : vector<8x64xf32>
    %61 = arith.mulf %40, %40 : vector<8x64xf32>
    %cst_27 = arith.constant 0.000000e+00 : f32
    %62 = vector.broadcast %cst_27 : f32 to vector<8x64xf32>
    %63 = arith.subf %62, %61 : vector<8x64xf32>
    %64 = math.exp %63 : vector<8x64xf32>
    %65 = arith.mulf %60, %64 : vector<8x64xf32>
    %cst_28 = arith.constant 1.000000e+00 : f32
    %66 = vector.broadcast %cst_28 : f32 to vector<8x64xf32>
    %67 = arith.subf %66, %65 : vector<8x64xf32>
    %68 = arith.mulf %39, %67 : vector<8x64xf32>
    %cst_29 = arith.constant 1.000000e+00 : f32
    %69 = vector.broadcast %cst_29 : f32 to vector<8x64xf32>
    %70 = arith.addf %69, %68 : vector<8x64xf32>
    %71 = arith.mulf %32, %70 : vector<8x64xf32>
    %c0_30 = arith.constant 0 : index
    %c0_31 = arith.constant 0 : index
    %72 = vector.load %arg6[%c0_30, %c0_31] : memref<64x64xbf16, #tpu.memory_space<vmem>>, vector<64x64xbf16>
    %73 = arith.truncf %71 : vector<8x64xf32> to vector<8x64xbf16>
    %cst_32 = arith.constant dense<0.000000e+00> : vector<8x64xf32>
    %74 = tpu.matmul %73, %72, %cst_32 {dimension_numbers = #tpu.dot_dimension_numbers<[1], [0], [0], [1], [0, 0, 1, 1], [], []>} : vector<8x64xbf16>, vector<64x64xbf16>, vector<8x64xf32> -> vector<8x64xf32>
    %c0_33 = arith.constant 0 : index
    %c0_34 = arith.constant 0 : index
    %75 = vector.load %arg7[%c0_33, %c0_34] : memref<1x64xf32, #tpu.memory_space<vmem>>, vector<1x64xf32>
    %76 = vector.broadcast %75 : vector<1x64xf32> to vector<8x64xf32>
    %77 = arith.addf %74, %76 : vector<8x64xf32>
    %c0_35 = arith.constant 0 : index
    %c0_36 = arith.constant 0 : index
    %78 = vector.load %arg8[%c0_35, %c0_36] : memref<1x64xf32, #tpu.memory_space<vmem>>, vector<1x64xf32>
    %c0_37 = arith.constant 0 : index
    %c0_38 = arith.constant 0 : index
    %79 = vector.load %arg9[%c0_37, %c0_38] : memref<1x64xf32, #tpu.memory_space<vmem>>, vector<1x64xf32>
    %cst_39 = arith.constant dense<0.000000e+00> : vector<8xf32>
    %80 = vector.multi_reduction <add>, %77, %cst_39 [1] : vector<8x64xf32> to vector<8xf32>
    %81 = vector.shape_cast %80 : vector<8xf32> to vector<8x1xf32>
    %cst_40 = arith.constant 6.400000e+01 : f32
    %82 = vector.broadcast %cst_40 : f32 to vector<8x1xf32>
    %83 = arith.divf %81, %82 : vector<8x1xf32>
    %84 = vector.broadcast %83 : vector<8x1xf32> to vector<8x64xf32>
    %85 = arith.subf %77, %84 : vector<8x64xf32>
    %86 = arith.mulf %85, %85 : vector<8x64xf32>
    %cst_41 = arith.constant dense<0.000000e+00> : vector<8xf32>
    %87 = vector.multi_reduction <add>, %86, %cst_41 [1] : vector<8x64xf32> to vector<8xf32>
    %88 = vector.shape_cast %87 : vector<8xf32> to vector<8x1xf32>
    %cst_42 = arith.constant 6.400000e+01 : f32
    %89 = vector.broadcast %cst_42 : f32 to vector<8x1xf32>
    %90 = arith.divf %88, %89 : vector<8x1xf32>
    %91 = vector.broadcast %83 : vector<8x1xf32> to vector<8x64xf32>
    %92 = arith.subf %77, %91 : vector<8x64xf32>
    %cst_43 = arith.constant 9.99999974E-6 : f32
    %93 = vector.broadcast %cst_43 : f32 to vector<8x1xf32>
    %94 = arith.addf %90, %93 : vector<8x1xf32>
    %95 = math.rsqrt %94 : vector<8x1xf32>
    %96 = vector.broadcast %95 : vector<8x1xf32> to vector<8x64xf32>
    %97 = arith.mulf %92, %96 : vector<8x64xf32>
    %98 = vector.broadcast %78 : vector<1x64xf32> to vector<8x64xf32>
    %99 = arith.mulf %97, %98 : vector<8x64xf32>
    %100 = vector.broadcast %79 : vector<1x64xf32> to vector<8x64xf32>
    %101 = arith.addf %99, %100 : vector<8x64xf32>
    %cst_44 = arith.constant 5.000000e-01 : f32
    %102 = vector.broadcast %cst_44 : f32 to vector<8x64xf32>
    %103 = arith.mulf %102, %101 : vector<8x64xf32>
    %cst_45 = arith.constant 0.707106769 : f32
    %104 = vector.broadcast %cst_45 : f32 to vector<8x64xf32>
    %105 = arith.mulf %101, %104 : vector<8x64xf32>
    %cst_46 = arith.constant 0.000000e+00 : f32
    %106 = vector.broadcast %cst_46 : f32 to vector<8x64xf32>
    %107 = arith.cmpf oge, %105, %106 : vector<8x64xf32>
    %cst_47 = arith.constant 1.000000e+00 : f32
    %cst_48 = arith.constant -1.000000e+00 : f32
    %108 = vector.broadcast %cst_47 : f32 to vector<8x64xf32>
    %109 = vector.broadcast %cst_48 : f32 to vector<8x64xf32>
    %110 = arith.select %107, %108, %109 : vector<8x64xi1>, vector<8x64xf32>
    %111 = math.absf %105 : vector<8x64xf32>
    %cst_49 = arith.constant 0.327591091 : f32
    %112 = vector.broadcast %cst_49 : f32 to vector<8x64xf32>
    %113 = arith.mulf %112, %111 : vector<8x64xf32>
    %cst_50 = arith.constant 1.000000e+00 : f32
    %114 = vector.broadcast %cst_50 : f32 to vector<8x64xf32>
    %115 = arith.addf %114, %113 : vector<8x64xf32>
    %cst_51 = arith.constant 1.000000e+00 : f32
    %116 = vector.broadcast %cst_51 : f32 to vector<8x64xf32>
    %117 = arith.divf %116, %115 : vector<8x64xf32>
    %cst_52 = arith.constant 1.06140542 : f32
    %118 = vector.broadcast %cst_52 : f32 to vector<8x64xf32>
    %119 = arith.mulf %118, %117 : vector<8x64xf32>
    %cst_53 = arith.constant -1.45315206 : f32
    %120 = vector.broadcast %cst_53 : f32 to vector<8x64xf32>
    %121 = arith.addf %119, %120 : vector<8x64xf32>
    %122 = arith.mulf %121, %117 : vector<8x64xf32>
    %cst_54 = arith.constant 1.42141378 : f32
    %123 = vector.broadcast %cst_54 : f32 to vector<8x64xf32>
    %124 = arith.addf %122, %123 : vector<8x64xf32>
    %125 = arith.mulf %124, %117 : vector<8x64xf32>
    %cst_55 = arith.constant -0.284496725 : f32
    %126 = vector.broadcast %cst_55 : f32 to vector<8x64xf32>
    %127 = arith.addf %125, %126 : vector<8x64xf32>
    %128 = arith.mulf %127, %117 : vector<8x64xf32>
    %cst_56 = arith.constant 0.254829586 : f32
    %129 = vector.broadcast %cst_56 : f32 to vector<8x64xf32>
    %130 = arith.addf %128, %129 : vector<8x64xf32>
    %131 = arith.mulf %130, %117 : vector<8x64xf32>
    %132 = arith.mulf %111, %111 : vector<8x64xf32>
    %cst_57 = arith.constant 0.000000e+00 : f32
    %133 = vector.broadcast %cst_57 : f32 to vector<8x64xf32>
    %134 = arith.subf %133, %132 : vector<8x64xf32>
    %135 = math.exp %134 : vector<8x64xf32>
    %136 = arith.mulf %131, %135 : vector<8x64xf32>
    %cst_58 = arith.constant 1.000000e+00 : f32
    %137 = vector.broadcast %cst_58 : f32 to vector<8x64xf32>
    %138 = arith.subf %137, %136 : vector<8x64xf32>
    %139 = arith.mulf %110, %138 : vector<8x64xf32>
    %cst_59 = arith.constant 1.000000e+00 : f32
    %140 = vector.broadcast %cst_59 : f32 to vector<8x64xf32>
    %141 = arith.addf %140, %139 : vector<8x64xf32>
    %142 = arith.mulf %103, %141 : vector<8x64xf32>
    %c0_60 = arith.constant 0 : index
    %c0_61 = arith.constant 0 : index
    %143 = vector.load %arg10[%c0_60, %c0_61] : memref<1x64xf32, #tpu.memory_space<vmem>>, vector<1x64xf32>
    %144 = vector.broadcast %143 : vector<1x64xf32> to vector<8x64xf32>
    %145 = arith.addf %142, %144 : vector<8x64xf32>
    %c0_62 = arith.constant 0 : index
    %c0_63 = arith.constant 0 : index
    %c0_64 = arith.constant 0 : index
    %146 = vector.load %arg11[%c0_62, %c0_63, %c0_64] : memref<2x64x64xbf16, #tpu.memory_space<vmem>>, vector<1x64x64xbf16>
    %147 = vector.shape_cast %146 : vector<1x64x64xbf16> to vector<64x64xbf16>
    %148 = arith.truncf %145 : vector<8x64xf32> to vector<8x64xbf16>
    %cst_65 = arith.constant dense<0.000000e+00> : vector<8x64xf32>
    %149 = tpu.matmul %148, %147, %cst_65 {dimension_numbers = #tpu.dot_dimension_numbers<[1], [0], [0], [1], [0, 0, 1, 1], [], []>} : vector<8x64xbf16>, vector<64x64xbf16>, vector<8x64xf32> -> vector<8x64xf32>
    %c0_66 = arith.constant 0 : index
    %c0_67 = arith.constant 0 : index
    %c0_68 = arith.constant 0 : index
    %150 = vector.load %arg12[%c0_66, %c0_67, %c0_68] : memref<2x1x64xf32, #tpu.memory_space<vmem>>, vector<1x1x64xf32>
    %151 = vector.shape_cast %150 : vector<1x1x64xf32> to vector<1x64xf32>
    %152 = vector.broadcast %151 : vector<1x64xf32> to vector<8x64xf32>
    %153 = arith.addf %149, %152 : vector<8x64xf32>
    %c0_69 = arith.constant 0 : index
    %c0_70 = arith.constant 0 : index
    %c0_71 = arith.constant 0 : index
    %154 = vector.load %arg13[%c0_69, %c0_70, %c0_71] : memref<2x64x64xbf16, #tpu.memory_space<vmem>>, vector<1x64x64xbf16>
    %155 = vector.shape_cast %154 : vector<1x64x64xbf16> to vector<64x64xbf16>
    %156 = arith.truncf %153 : vector<8x64xf32> to vector<8x64xbf16>
    %cst_72 = arith.constant dense<0.000000e+00> : vector<8x64xf32>
    %157 = tpu.matmul %156, %155, %cst_72 {dimension_numbers = #tpu.dot_dimension_numbers<[1], [0], [0], [1], [0, 0, 1, 1], [], []>} : vector<8x64xbf16>, vector<64x64xbf16>, vector<8x64xf32> -> vector<8x64xf32>
    %c0_73 = arith.constant 0 : index
    %c0_74 = arith.constant 0 : index
    %c0_75 = arith.constant 0 : index
    %158 = vector.load %arg14[%c0_73, %c0_74, %c0_75] : memref<2x1x64xf32, #tpu.memory_space<vmem>>, vector<1x1x64xf32>
    %159 = vector.shape_cast %158 : vector<1x1x64xf32> to vector<1x64xf32>
    %160 = vector.broadcast %159 : vector<1x64xf32> to vector<8x64xf32>
    %161 = arith.addf %157, %160 : vector<8x64xf32>
    %162 = arith.addf %145, %161 : vector<8x64xf32>
    %c0_76 = arith.constant 0 : index
    %c0_77 = arith.constant 0 : index
    %c0_78 = arith.constant 0 : index
    %163 = vector.load %arg15[%c0_76, %c0_77, %c0_78] : memref<2x1x64xf32, #tpu.memory_space<vmem>>, vector<1x1x64xf32>
    %164 = vector.shape_cast %163 : vector<1x1x64xf32> to vector<1x64xf32>
    %c0_79 = arith.constant 0 : index
    %c0_80 = arith.constant 0 : index
    %c0_81 = arith.constant 0 : index
    %165 = vector.load %arg16[%c0_79, %c0_80, %c0_81] : memref<2x1x64xf32, #tpu.memory_space<vmem>>, vector<1x1x64xf32>
    %166 = vector.shape_cast %165 : vector<1x1x64xf32> to vector<1x64xf32>
    %cst_82 = arith.constant dense<0.000000e+00> : vector<8xf32>
    %167 = vector.multi_reduction <add>, %162, %cst_82 [1] : vector<8x64xf32> to vector<8xf32>
    %168 = vector.shape_cast %167 : vector<8xf32> to vector<8x1xf32>
    %cst_83 = arith.constant 6.400000e+01 : f32
    %169 = vector.broadcast %cst_83 : f32 to vector<8x1xf32>
    %170 = arith.divf %168, %169 : vector<8x1xf32>
    %171 = vector.broadcast %170 : vector<8x1xf32> to vector<8x64xf32>
    %172 = arith.subf %162, %171 : vector<8x64xf32>
    %173 = arith.mulf %172, %172 : vector<8x64xf32>
    %cst_84 = arith.constant dense<0.000000e+00> : vector<8xf32>
    %174 = vector.multi_reduction <add>, %173, %cst_84 [1] : vector<8x64xf32> to vector<8xf32>
    %175 = vector.shape_cast %174 : vector<8xf32> to vector<8x1xf32>
    %cst_85 = arith.constant 6.400000e+01 : f32
    %176 = vector.broadcast %cst_85 : f32 to vector<8x1xf32>
    %177 = arith.divf %175, %176 : vector<8x1xf32>
    %178 = vector.broadcast %170 : vector<8x1xf32> to vector<8x64xf32>
    %179 = arith.subf %162, %178 : vector<8x64xf32>
    %cst_86 = arith.constant 9.99999974E-6 : f32
    %180 = vector.broadcast %cst_86 : f32 to vector<8x1xf32>
    %181 = arith.addf %177, %180 : vector<8x1xf32>
    %182 = math.rsqrt %181 : vector<8x1xf32>
    %183 = vector.broadcast %182 : vector<8x1xf32> to vector<8x64xf32>
    %184 = arith.mulf %179, %183 : vector<8x64xf32>
    %185 = vector.broadcast %164 : vector<1x64xf32> to vector<8x64xf32>
    %186 = arith.mulf %184, %185 : vector<8x64xf32>
    %187 = vector.broadcast %166 : vector<1x64xf32> to vector<8x64xf32>
    %188 = arith.addf %186, %187 : vector<8x64xf32>
    %c0_87 = arith.constant 0 : index
    %c0_88 = arith.constant 0 : index
    %c0_89 = arith.constant 0 : index
    %189 = vector.load %arg17[%c0_87, %c0_88, %c0_89] : memref<2x64x256xbf16, #tpu.memory_space<vmem>>, vector<1x64x256xbf16>
    %190 = vector.shape_cast %189 : vector<1x64x256xbf16> to vector<64x256xbf16>
    %191 = arith.truncf %188 : vector<8x64xf32> to vector<8x64xbf16>
    %cst_90 = arith.constant dense<0.000000e+00> : vector<8x256xf32>
    %192 = tpu.matmul %191, %190, %cst_90 {dimension_numbers = #tpu.dot_dimension_numbers<[1], [0], [0], [1], [0, 0, 1, 1], [], []>} : vector<8x64xbf16>, vector<64x256xbf16>, vector<8x256xf32> -> vector<8x256xf32>
    %c0_91 = arith.constant 0 : index
    %c0_92 = arith.constant 0 : index
    %c0_93 = arith.constant 0 : index
    %193 = vector.load %arg18[%c0_91, %c0_92, %c0_93] : memref<2x1x256xf32, #tpu.memory_space<vmem>>, vector<1x1x256xf32>
    %194 = vector.shape_cast %193 : vector<1x1x256xf32> to vector<1x256xf32>
    %195 = vector.broadcast %194 : vector<1x256xf32> to vector<8x256xf32>
    %196 = arith.addf %192, %195 : vector<8x256xf32>
    %cst_94 = arith.constant 5.000000e-01 : f32
    %197 = vector.broadcast %cst_94 : f32 to vector<8x256xf32>
    %198 = arith.mulf %197, %196 : vector<8x256xf32>
    %cst_95 = arith.constant 0.707106769 : f32
    %199 = vector.broadcast %cst_95 : f32 to vector<8x256xf32>
    %200 = arith.mulf %196, %199 : vector<8x256xf32>
    %cst_96 = arith.constant 0.000000e+00 : f32
    %201 = vector.broadcast %cst_96 : f32 to vector<8x256xf32>
    %202 = arith.cmpf oge, %200, %201 : vector<8x256xf32>
    %cst_97 = arith.constant 1.000000e+00 : f32
    %cst_98 = arith.constant -1.000000e+00 : f32
    %203 = vector.broadcast %cst_97 : f32 to vector<8x256xf32>
    %204 = vector.broadcast %cst_98 : f32 to vector<8x256xf32>
    %205 = arith.select %202, %203, %204 : vector<8x256xi1>, vector<8x256xf32>
    %206 = math.absf %200 : vector<8x256xf32>
    %cst_99 = arith.constant 0.327591091 : f32
    %207 = vector.broadcast %cst_99 : f32 to vector<8x256xf32>
    %208 = arith.mulf %207, %206 : vector<8x256xf32>
    %cst_100 = arith.constant 1.000000e+00 : f32
    %209 = vector.broadcast %cst_100 : f32 to vector<8x256xf32>
    %210 = arith.addf %209, %208 : vector<8x256xf32>
    %cst_101 = arith.constant 1.000000e+00 : f32
    %211 = vector.broadcast %cst_101 : f32 to vector<8x256xf32>
    %212 = arith.divf %211, %210 : vector<8x256xf32>
    %cst_102 = arith.constant 1.06140542 : f32
    %213 = vector.broadcast %cst_102 : f32 to vector<8x256xf32>
    %214 = arith.mulf %213, %212 : vector<8x256xf32>
    %cst_103 = arith.constant -1.45315206 : f32
    %215 = vector.broadcast %cst_103 : f32 to vector<8x256xf32>
    %216 = arith.addf %214, %215 : vector<8x256xf32>
    %217 = arith.mulf %216, %212 : vector<8x256xf32>
    %cst_104 = arith.constant 1.42141378 : f32
    %218 = vector.broadcast %cst_104 : f32 to vector<8x256xf32>
    %219 = arith.addf %217, %218 : vector<8x256xf32>
    %220 = arith.mulf %219, %212 : vector<8x256xf32>
    %cst_105 = arith.constant -0.284496725 : f32
    %221 = vector.broadcast %cst_105 : f32 to vector<8x256xf32>
    %222 = arith.addf %220, %221 : vector<8x256xf32>
    %223 = arith.mulf %222, %212 : vector<8x256xf32>
    %cst_106 = arith.constant 0.254829586 : f32
    %224 = vector.broadcast %cst_106 : f32 to vector<8x256xf32>
    %225 = arith.addf %223, %224 : vector<8x256xf32>
    %226 = arith.mulf %225, %212 : vector<8x256xf32>
    %227 = arith.mulf %206, %206 : vector<8x256xf32>
    %cst_107 = arith.constant 0.000000e+00 : f32
    %228 = vector.broadcast %cst_107 : f32 to vector<8x256xf32>
    %229 = arith.subf %228, %227 : vector<8x256xf32>
    %230 = math.exp %229 : vector<8x256xf32>
    %231 = arith.mulf %226, %230 : vector<8x256xf32>
    %cst_108 = arith.constant 1.000000e+00 : f32
    %232 = vector.broadcast %cst_108 : f32 to vector<8x256xf32>
    %233 = arith.subf %232, %231 : vector<8x256xf32>
    %234 = arith.mulf %205, %233 : vector<8x256xf32>
    %cst_109 = arith.constant 1.000000e+00 : f32
    %235 = vector.broadcast %cst_109 : f32 to vector<8x256xf32>
    %236 = arith.addf %235, %234 : vector<8x256xf32>
    %237 = arith.mulf %198, %236 : vector<8x256xf32>
    %c0_110 = arith.constant 0 : index
    %c0_111 = arith.constant 0 : index
    %c0_112 = arith.constant 0 : index
    %238 = vector.load %arg19[%c0_110, %c0_111, %c0_112] : memref<2x256x64xbf16, #tpu.memory_space<vmem>>, vector<1x256x64xbf16>
    %239 = vector.shape_cast %238 : vector<1x256x64xbf16> to vector<256x64xbf16>
    %240 = arith.truncf %237 : vector<8x256xf32> to vector<8x256xbf16>
    %cst_113 = arith.constant dense<0.000000e+00> : vector<8x64xf32>
    %241 = tpu.matmul %240, %239, %cst_113 {dimension_numbers = #tpu.dot_dimension_numbers<[1], [0], [0], [1], [0, 0, 1, 1], [], []>} : vector<8x256xbf16>, vector<256x64xbf16>, vector<8x64xf32> -> vector<8x64xf32>
    %c0_114 = arith.constant 0 : index
    %c0_115 = arith.constant 0 : index
    %c0_116 = arith.constant 0 : index
    %242 = vector.load %arg20[%c0_114, %c0_115, %c0_116] : memref<2x1x64xf32, #tpu.memory_space<vmem>>, vector<1x1x64xf32>
    %243 = vector.shape_cast %242 : vector<1x1x64xf32> to vector<1x64xf32>
    %244 = vector.broadcast %243 : vector<1x64xf32> to vector<8x64xf32>
    %245 = arith.addf %241, %244 : vector<8x64xf32>
    %246 = arith.addf %188, %245 : vector<8x64xf32>
    %c0_117 = arith.constant 0 : index
    %c0_118 = arith.constant 0 : index
    %c0_119 = arith.constant 0 : index
    %247 = vector.load %arg21[%c0_117, %c0_118, %c0_119] : memref<2x1x64xf32, #tpu.memory_space<vmem>>, vector<1x1x64xf32>
    %248 = vector.shape_cast %247 : vector<1x1x64xf32> to vector<1x64xf32>
    %c0_120 = arith.constant 0 : index
    %c0_121 = arith.constant 0 : index
    %c0_122 = arith.constant 0 : index
    %249 = vector.load %arg22[%c0_120, %c0_121, %c0_122] : memref<2x1x64xf32, #tpu.memory_space<vmem>>, vector<1x1x64xf32>
    %250 = vector.shape_cast %249 : vector<1x1x64xf32> to vector<1x64xf32>
    %cst_123 = arith.constant dense<0.000000e+00> : vector<8xf32>
    %251 = vector.multi_reduction <add>, %246, %cst_123 [1] : vector<8x64xf32> to vector<8xf32>
    %252 = vector.shape_cast %251 : vector<8xf32> to vector<8x1xf32>
    %cst_124 = arith.constant 6.400000e+01 : f32
    %253 = vector.broadcast %cst_124 : f32 to vector<8x1xf32>
    %254 = arith.divf %252, %253 : vector<8x1xf32>
    %255 = vector.broadcast %254 : vector<8x1xf32> to vector<8x64xf32>
    %256 = arith.subf %246, %255 : vector<8x64xf32>
    %257 = arith.mulf %256, %256 : vector<8x64xf32>
    %cst_125 = arith.constant dense<0.000000e+00> : vector<8xf32>
    %258 = vector.multi_reduction <add>, %257, %cst_125 [1] : vector<8x64xf32> to vector<8xf32>
    %259 = vector.shape_cast %258 : vector<8xf32> to vector<8x1xf32>
    %cst_126 = arith.constant 6.400000e+01 : f32
    %260 = vector.broadcast %cst_126 : f32 to vector<8x1xf32>
    %261 = arith.divf %259, %260 : vector<8x1xf32>
    %262 = vector.broadcast %254 : vector<8x1xf32> to vector<8x64xf32>
    %263 = arith.subf %246, %262 : vector<8x64xf32>
    %cst_127 = arith.constant 9.99999974E-6 : f32
    %264 = vector.broadcast %cst_127 : f32 to vector<8x1xf32>
    %265 = arith.addf %261, %264 : vector<8x1xf32>
    %266 = math.rsqrt %265 : vector<8x1xf32>
    %267 = vector.broadcast %266 : vector<8x1xf32> to vector<8x64xf32>
    %268 = arith.mulf %263, %267 : vector<8x64xf32>
    %269 = vector.broadcast %248 : vector<1x64xf32> to vector<8x64xf32>
    %270 = arith.mulf %268, %269 : vector<8x64xf32>
    %271 = vector.broadcast %250 : vector<1x64xf32> to vector<8x64xf32>
    %272 = arith.addf %270, %271 : vector<8x64xf32>
    %c1 = arith.constant 1 : index
    %c0_128 = arith.constant 0 : index
    %c0_129 = arith.constant 0 : index
    %273 = vector.load %arg11[%c1, %c0_128, %c0_129] : memref<2x64x64xbf16, #tpu.memory_space<vmem>>, vector<1x64x64xbf16>
    %274 = vector.shape_cast %273 : vector<1x64x64xbf16> to vector<64x64xbf16>
    %275 = arith.truncf %272 : vector<8x64xf32> to vector<8x64xbf16>
    %cst_130 = arith.constant dense<0.000000e+00> : vector<8x64xf32>
    %276 = tpu.matmul %275, %274, %cst_130 {dimension_numbers = #tpu.dot_dimension_numbers<[1], [0], [0], [1], [0, 0, 1, 1], [], []>} : vector<8x64xbf16>, vector<64x64xbf16>, vector<8x64xf32> -> vector<8x64xf32>
    %c1_131 = arith.constant 1 : index
    %c0_132 = arith.constant 0 : index
    %c0_133 = arith.constant 0 : index
    %277 = vector.load %arg12[%c1_131, %c0_132, %c0_133] : memref<2x1x64xf32, #tpu.memory_space<vmem>>, vector<1x1x64xf32>
    %278 = vector.shape_cast %277 : vector<1x1x64xf32> to vector<1x64xf32>
    %279 = vector.broadcast %278 : vector<1x64xf32> to vector<8x64xf32>
    %280 = arith.addf %276, %279 : vector<8x64xf32>
    %c1_134 = arith.constant 1 : index
    %c0_135 = arith.constant 0 : index
    %c0_136 = arith.constant 0 : index
    %281 = vector.load %arg13[%c1_134, %c0_135, %c0_136] : memref<2x64x64xbf16, #tpu.memory_space<vmem>>, vector<1x64x64xbf16>
    %282 = vector.shape_cast %281 : vector<1x64x64xbf16> to vector<64x64xbf16>
    %283 = arith.truncf %280 : vector<8x64xf32> to vector<8x64xbf16>
    %cst_137 = arith.constant dense<0.000000e+00> : vector<8x64xf32>
    %284 = tpu.matmul %283, %282, %cst_137 {dimension_numbers = #tpu.dot_dimension_numbers<[1], [0], [0], [1], [0, 0, 1, 1], [], []>} : vector<8x64xbf16>, vector<64x64xbf16>, vector<8x64xf32> -> vector<8x64xf32>
    %c1_138 = arith.constant 1 : index
    %c0_139 = arith.constant 0 : index
    %c0_140 = arith.constant 0 : index
    %285 = vector.load %arg14[%c1_138, %c0_139, %c0_140] : memref<2x1x64xf32, #tpu.memory_space<vmem>>, vector<1x1x64xf32>
    %286 = vector.shape_cast %285 : vector<1x1x64xf32> to vector<1x64xf32>
    %287 = vector.broadcast %286 : vector<1x64xf32> to vector<8x64xf32>
    %288 = arith.addf %284, %287 : vector<8x64xf32>
    %289 = arith.addf %272, %288 : vector<8x64xf32>
    %c1_141 = arith.constant 1 : index
    %c0_142 = arith.constant 0 : index
    %c0_143 = arith.constant 0 : index
    %290 = vector.load %arg15[%c1_141, %c0_142, %c0_143] : memref<2x1x64xf32, #tpu.memory_space<vmem>>, vector<1x1x64xf32>
    %291 = vector.shape_cast %290 : vector<1x1x64xf32> to vector<1x64xf32>
    %c1_144 = arith.constant 1 : index
    %c0_145 = arith.constant 0 : index
    %c0_146 = arith.constant 0 : index
    %292 = vector.load %arg16[%c1_144, %c0_145, %c0_146] : memref<2x1x64xf32, #tpu.memory_space<vmem>>, vector<1x1x64xf32>
    %293 = vector.shape_cast %292 : vector<1x1x64xf32> to vector<1x64xf32>
    %cst_147 = arith.constant dense<0.000000e+00> : vector<8xf32>
    %294 = vector.multi_reduction <add>, %289, %cst_147 [1] : vector<8x64xf32> to vector<8xf32>
    %295 = vector.shape_cast %294 : vector<8xf32> to vector<8x1xf32>
    %cst_148 = arith.constant 6.400000e+01 : f32
    %296 = vector.broadcast %cst_148 : f32 to vector<8x1xf32>
    %297 = arith.divf %295, %296 : vector<8x1xf32>
    %298 = vector.broadcast %297 : vector<8x1xf32> to vector<8x64xf32>
    %299 = arith.subf %289, %298 : vector<8x64xf32>
    %300 = arith.mulf %299, %299 : vector<8x64xf32>
    %cst_149 = arith.constant dense<0.000000e+00> : vector<8xf32>
    %301 = vector.multi_reduction <add>, %300, %cst_149 [1] : vector<8x64xf32> to vector<8xf32>
    %302 = vector.shape_cast %301 : vector<8xf32> to vector<8x1xf32>
    %cst_150 = arith.constant 6.400000e+01 : f32
    %303 = vector.broadcast %cst_150 : f32 to vector<8x1xf32>
    %304 = arith.divf %302, %303 : vector<8x1xf32>
    %305 = vector.broadcast %297 : vector<8x1xf32> to vector<8x64xf32>
    %306 = arith.subf %289, %305 : vector<8x64xf32>
    %cst_151 = arith.constant 9.99999974E-6 : f32
    %307 = vector.broadcast %cst_151 : f32 to vector<8x1xf32>
    %308 = arith.addf %304, %307 : vector<8x1xf32>
    %309 = math.rsqrt %308 : vector<8x1xf32>
    %310 = vector.broadcast %309 : vector<8x1xf32> to vector<8x64xf32>
    %311 = arith.mulf %306, %310 : vector<8x64xf32>
    %312 = vector.broadcast %291 : vector<1x64xf32> to vector<8x64xf32>
    %313 = arith.mulf %311, %312 : vector<8x64xf32>
    %314 = vector.broadcast %293 : vector<1x64xf32> to vector<8x64xf32>
    %315 = arith.addf %313, %314 : vector<8x64xf32>
    %c1_152 = arith.constant 1 : index
    %c0_153 = arith.constant 0 : index
    %c0_154 = arith.constant 0 : index
    %316 = vector.load %arg17[%c1_152, %c0_153, %c0_154] : memref<2x64x256xbf16, #tpu.memory_space<vmem>>, vector<1x64x256xbf16>
    %317 = vector.shape_cast %316 : vector<1x64x256xbf16> to vector<64x256xbf16>
    %318 = arith.truncf %315 : vector<8x64xf32> to vector<8x64xbf16>
    %cst_155 = arith.constant dense<0.000000e+00> : vector<8x256xf32>
    %319 = tpu.matmul %318, %317, %cst_155 {dimension_numbers = #tpu.dot_dimension_numbers<[1], [0], [0], [1], [0, 0, 1, 1], [], []>} : vector<8x64xbf16>, vector<64x256xbf16>, vector<8x256xf32> -> vector<8x256xf32>
    %c1_156 = arith.constant 1 : index
    %c0_157 = arith.constant 0 : index
    %c0_158 = arith.constant 0 : index
    %320 = vector.load %arg18[%c1_156, %c0_157, %c0_158] : memref<2x1x256xf32, #tpu.memory_space<vmem>>, vector<1x1x256xf32>
    %321 = vector.shape_cast %320 : vector<1x1x256xf32> to vector<1x256xf32>
    %322 = vector.broadcast %321 : vector<1x256xf32> to vector<8x256xf32>
    %323 = arith.addf %319, %322 : vector<8x256xf32>
    %cst_159 = arith.constant 5.000000e-01 : f32
    %324 = vector.broadcast %cst_159 : f32 to vector<8x256xf32>
    %325 = arith.mulf %324, %323 : vector<8x256xf32>
    %cst_160 = arith.constant 0.707106769 : f32
    %326 = vector.broadcast %cst_160 : f32 to vector<8x256xf32>
    %327 = arith.mulf %323, %326 : vector<8x256xf32>
    %cst_161 = arith.constant 0.000000e+00 : f32
    %328 = vector.broadcast %cst_161 : f32 to vector<8x256xf32>
    %329 = arith.cmpf oge, %327, %328 : vector<8x256xf32>
    %cst_162 = arith.constant 1.000000e+00 : f32
    %cst_163 = arith.constant -1.000000e+00 : f32
    %330 = vector.broadcast %cst_162 : f32 to vector<8x256xf32>
    %331 = vector.broadcast %cst_163 : f32 to vector<8x256xf32>
    %332 = arith.select %329, %330, %331 : vector<8x256xi1>, vector<8x256xf32>
    %333 = math.absf %327 : vector<8x256xf32>
    %cst_164 = arith.constant 0.327591091 : f32
    %334 = vector.broadcast %cst_164 : f32 to vector<8x256xf32>
    %335 = arith.mulf %334, %333 : vector<8x256xf32>
    %cst_165 = arith.constant 1.000000e+00 : f32
    %336 = vector.broadcast %cst_165 : f32 to vector<8x256xf32>
    %337 = arith.addf %336, %335 : vector<8x256xf32>
    %cst_166 = arith.constant 1.000000e+00 : f32
    %338 = vector.broadcast %cst_166 : f32 to vector<8x256xf32>
    %339 = arith.divf %338, %337 : vector<8x256xf32>
    %cst_167 = arith.constant 1.06140542 : f32
    %340 = vector.broadcast %cst_167 : f32 to vector<8x256xf32>
    %341 = arith.mulf %340, %339 : vector<8x256xf32>
    %cst_168 = arith.constant -1.45315206 : f32
    %342 = vector.broadcast %cst_168 : f32 to vector<8x256xf32>
    %343 = arith.addf %341, %342 : vector<8x256xf32>
    %344 = arith.mulf %343, %339 : vector<8x256xf32>
    %cst_169 = arith.constant 1.42141378 : f32
    %345 = vector.broadcast %cst_169 : f32 to vector<8x256xf32>
    %346 = arith.addf %344, %345 : vector<8x256xf32>
    %347 = arith.mulf %346, %339 : vector<8x256xf32>
    %cst_170 = arith.constant -0.284496725 : f32
    %348 = vector.broadcast %cst_170 : f32 to vector<8x256xf32>
    %349 = arith.addf %347, %348 : vector<8x256xf32>
    %350 = arith.mulf %349, %339 : vector<8x256xf32>
    %cst_171 = arith.constant 0.254829586 : f32
    %351 = vector.broadcast %cst_171 : f32 to vector<8x256xf32>
    %352 = arith.addf %350, %351 : vector<8x256xf32>
    %353 = arith.mulf %352, %339 : vector<8x256xf32>
    %354 = arith.mulf %333, %333 : vector<8x256xf32>
    %cst_172 = arith.constant 0.000000e+00 : f32
    %355 = vector.broadcast %cst_172 : f32 to vector<8x256xf32>
    %356 = arith.subf %355, %354 : vector<8x256xf32>
    %357 = math.exp %356 : vector<8x256xf32>
    %358 = arith.mulf %353, %357 : vector<8x256xf32>
    %cst_173 = arith.constant 1.000000e+00 : f32
    %359 = vector.broadcast %cst_173 : f32 to vector<8x256xf32>
    %360 = arith.subf %359, %358 : vector<8x256xf32>
    %361 = arith.mulf %332, %360 : vector<8x256xf32>
    %cst_174 = arith.constant 1.000000e+00 : f32
    %362 = vector.broadcast %cst_174 : f32 to vector<8x256xf32>
    %363 = arith.addf %362, %361 : vector<8x256xf32>
    %364 = arith.mulf %325, %363 : vector<8x256xf32>
    %c1_175 = arith.constant 1 : index
    %c0_176 = arith.constant 0 : index
    %c0_177 = arith.constant 0 : index
    %365 = vector.load %arg19[%c1_175, %c0_176, %c0_177] : memref<2x256x64xbf16, #tpu.memory_space<vmem>>, vector<1x256x64xbf16>
    %366 = vector.shape_cast %365 : vector<1x256x64xbf16> to vector<256x64xbf16>
    %367 = arith.truncf %364 : vector<8x256xf32> to vector<8x256xbf16>
    %cst_178 = arith.constant dense<0.000000e+00> : vector<8x64xf32>
    %368 = tpu.matmul %367, %366, %cst_178 {dimension_numbers = #tpu.dot_dimension_numbers<[1], [0], [0], [1], [0, 0, 1, 1], [], []>} : vector<8x256xbf16>, vector<256x64xbf16>, vector<8x64xf32> -> vector<8x64xf32>
    %c1_179 = arith.constant 1 : index
    %c0_180 = arith.constant 0 : index
    %c0_181 = arith.constant 0 : index
    %369 = vector.load %arg20[%c1_179, %c0_180, %c0_181] : memref<2x1x64xf32, #tpu.memory_space<vmem>>, vector<1x1x64xf32>
    %370 = vector.shape_cast %369 : vector<1x1x64xf32> to vector<1x64xf32>
    %371 = vector.broadcast %370 : vector<1x64xf32> to vector<8x64xf32>
    %372 = arith.addf %368, %371 : vector<8x64xf32>
    %373 = arith.addf %315, %372 : vector<8x64xf32>
    %c1_182 = arith.constant 1 : index
    %c0_183 = arith.constant 0 : index
    %c0_184 = arith.constant 0 : index
    %374 = vector.load %arg21[%c1_182, %c0_183, %c0_184] : memref<2x1x64xf32, #tpu.memory_space<vmem>>, vector<1x1x64xf32>
    %375 = vector.shape_cast %374 : vector<1x1x64xf32> to vector<1x64xf32>
    %c1_185 = arith.constant 1 : index
    %c0_186 = arith.constant 0 : index
    %c0_187 = arith.constant 0 : index
    %376 = vector.load %arg22[%c1_185, %c0_186, %c0_187] : memref<2x1x64xf32, #tpu.memory_space<vmem>>, vector<1x1x64xf32>
    %377 = vector.shape_cast %376 : vector<1x1x64xf32> to vector<1x64xf32>
    %cst_188 = arith.constant dense<0.000000e+00> : vector<8xf32>
    %378 = vector.multi_reduction <add>, %373, %cst_188 [1] : vector<8x64xf32> to vector<8xf32>
    %379 = vector.shape_cast %378 : vector<8xf32> to vector<8x1xf32>
    %cst_189 = arith.constant 6.400000e+01 : f32
    %380 = vector.broadcast %cst_189 : f32 to vector<8x1xf32>
    %381 = arith.divf %379, %380 : vector<8x1xf32>
    %382 = vector.broadcast %381 : vector<8x1xf32> to vector<8x64xf32>
    %383 = arith.subf %373, %382 : vector<8x64xf32>
    %384 = arith.mulf %383, %383 : vector<8x64xf32>
    %cst_190 = arith.constant dense<0.000000e+00> : vector<8xf32>
    %385 = vector.multi_reduction <add>, %384, %cst_190 [1] : vector<8x64xf32> to vector<8xf32>
    %386 = vector.shape_cast %385 : vector<8xf32> to vector<8x1xf32>
    %cst_191 = arith.constant 6.400000e+01 : f32
    %387 = vector.broadcast %cst_191 : f32 to vector<8x1xf32>
    %388 = arith.divf %386, %387 : vector<8x1xf32>
    %389 = vector.broadcast %381 : vector<8x1xf32> to vector<8x64xf32>
    %390 = arith.subf %373, %389 : vector<8x64xf32>
    %cst_192 = arith.constant 9.99999974E-6 : f32
    %391 = vector.broadcast %cst_192 : f32 to vector<8x1xf32>
    %392 = arith.addf %388, %391 : vector<8x1xf32>
    %393 = math.rsqrt %392 : vector<8x1xf32>
    %394 = vector.broadcast %393 : vector<8x1xf32> to vector<8x64xf32>
    %395 = arith.mulf %390, %394 : vector<8x64xf32>
    %396 = vector.broadcast %375 : vector<1x64xf32> to vector<8x64xf32>
    %397 = arith.mulf %395, %396 : vector<8x64xf32>
    %398 = vector.broadcast %377 : vector<1x64xf32> to vector<8x64xf32>
    %399 = arith.addf %397, %398 : vector<8x64xf32>
    %400 = arith.addf %145, %399 : vector<8x64xf32>
    %c0_193 = arith.constant 0 : index
    %c0_194 = arith.constant 0 : index
    %401 = vector.load %arg23[%c0_193, %c0_194] : memref<64x64xbf16, #tpu.memory_space<vmem>>, vector<64x64xbf16>
    %402 = arith.truncf %400 : vector<8x64xf32> to vector<8x64xbf16>
    %cst_195 = arith.constant dense<0.000000e+00> : vector<8x64xf32>
    %403 = tpu.matmul %402, %401, %cst_195 {dimension_numbers = #tpu.dot_dimension_numbers<[1], [0], [0], [1], [0, 0, 1, 1], [], []>} : vector<8x64xbf16>, vector<64x64xbf16>, vector<8x64xf32> -> vector<8x64xf32>
    %c0_196 = arith.constant 0 : index
    %c0_197 = arith.constant 0 : index
    %404 = vector.load %arg24[%c0_196, %c0_197] : memref<1x64xf32, #tpu.memory_space<vmem>>, vector<1x64xf32>
    %405 = vector.broadcast %404 : vector<1x64xf32> to vector<8x64xf32>
    %406 = arith.addf %403, %405 : vector<8x64xf32>
    %c0_198 = arith.constant 0 : index
    %c0_199 = arith.constant 0 : index
    %407 = vector.load %arg25[%c0_198, %c0_199] : memref<64x64xbf16, #tpu.memory_space<vmem>>, vector<64x64xbf16>
    %408 = arith.truncf %406 : vector<8x64xf32> to vector<8x64xbf16>
    %cst_200 = arith.constant dense<0.000000e+00> : vector<8x64xf32>
    %409 = tpu.matmul %408, %407, %cst_200 {dimension_numbers = #tpu.dot_dimension_numbers<[1], [0], [0], [1], [0, 0, 1, 1], [], []>} : vector<8x64xbf16>, vector<64x64xbf16>, vector<8x64xf32> -> vector<8x64xf32>
    %c0_201 = arith.constant 0 : index
    %c0_202 = arith.constant 0 : index
    %410 = vector.load %arg26[%c0_201, %c0_202] : memref<1x64xf32, #tpu.memory_space<vmem>>, vector<1x64xf32>
    %411 = vector.broadcast %410 : vector<1x64xf32> to vector<8x64xf32>
    %412 = arith.addf %409, %411 : vector<8x64xf32>
    %413 = arith.addf %400, %412 : vector<8x64xf32>
    %c0_203 = arith.constant 0 : index
    %c0_204 = arith.constant 0 : index
    %414 = vector.load %arg27[%c0_203, %c0_204] : memref<64x64xbf16, #tpu.memory_space<vmem>>, vector<64x64xbf16>
    %415 = arith.truncf %413 : vector<8x64xf32> to vector<8x64xbf16>
    %cst_205 = arith.constant dense<0.000000e+00> : vector<8x64xf32>
    %416 = tpu.matmul %415, %414, %cst_205 {dimension_numbers = #tpu.dot_dimension_numbers<[1], [0], [0], [1], [0, 0, 1, 1], [], []>} : vector<8x64xbf16>, vector<64x64xbf16>, vector<8x64xf32> -> vector<8x64xf32>
    %c0_206 = arith.constant 0 : index
    %c0_207 = arith.constant 0 : index
    %417 = vector.load %arg28[%c0_206, %c0_207] : memref<1x64xf32, #tpu.memory_space<vmem>>, vector<1x64xf32>
    %418 = vector.broadcast %417 : vector<1x64xf32> to vector<8x64xf32>
    %419 = arith.addf %416, %418 : vector<8x64xf32>
    %c0_208 = arith.constant 0 : index
    %c0_209 = arith.constant 0 : index
    %420 = vector.load %arg8[%c0_208, %c0_209] : memref<1x64xf32, #tpu.memory_space<vmem>>, vector<1x64xf32>
    %c0_210 = arith.constant 0 : index
    %c0_211 = arith.constant 0 : index
    %421 = vector.load %arg9[%c0_210, %c0_211] : memref<1x64xf32, #tpu.memory_space<vmem>>, vector<1x64xf32>
    %cst_212 = arith.constant dense<0.000000e+00> : vector<8xf32>
    %422 = vector.multi_reduction <add>, %419, %cst_212 [1] : vector<8x64xf32> to vector<8xf32>
    %423 = vector.shape_cast %422 : vector<8xf32> to vector<8x1xf32>
    %cst_213 = arith.constant 6.400000e+01 : f32
    %424 = vector.broadcast %cst_213 : f32 to vector<8x1xf32>
    %425 = arith.divf %423, %424 : vector<8x1xf32>
    %426 = vector.broadcast %425 : vector<8x1xf32> to vector<8x64xf32>
    %427 = arith.subf %419, %426 : vector<8x64xf32>
    %428 = arith.mulf %427, %427 : vector<8x64xf32>
    %cst_214 = arith.constant dense<0.000000e+00> : vector<8xf32>
    %429 = vector.multi_reduction <add>, %428, %cst_214 [1] : vector<8x64xf32> to vector<8xf32>
    %430 = vector.shape_cast %429 : vector<8xf32> to vector<8x1xf32>
    %cst_215 = arith.constant 6.400000e+01 : f32
    %431 = vector.broadcast %cst_215 : f32 to vector<8x1xf32>
    %432 = arith.divf %430, %431 : vector<8x1xf32>
    %433 = vector.broadcast %425 : vector<8x1xf32> to vector<8x64xf32>
    %434 = arith.subf %419, %433 : vector<8x64xf32>
    %cst_216 = arith.constant 9.99999974E-6 : f32
    %435 = vector.broadcast %cst_216 : f32 to vector<8x1xf32>
    %436 = arith.addf %432, %435 : vector<8x1xf32>
    %437 = math.rsqrt %436 : vector<8x1xf32>
    %438 = vector.broadcast %437 : vector<8x1xf32> to vector<8x64xf32>
    %439 = arith.mulf %434, %438 : vector<8x64xf32>
    %440 = vector.broadcast %420 : vector<1x64xf32> to vector<8x64xf32>
    %441 = arith.mulf %439, %440 : vector<8x64xf32>
    %442 = vector.broadcast %421 : vector<1x64xf32> to vector<8x64xf32>
    %443 = arith.addf %441, %442 : vector<8x64xf32>
    %cst_217 = arith.constant 5.000000e-01 : f32
    %444 = vector.broadcast %cst_217 : f32 to vector<8x64xf32>
    %445 = arith.mulf %444, %443 : vector<8x64xf32>
    %cst_218 = arith.constant 0.707106769 : f32
    %446 = vector.broadcast %cst_218 : f32 to vector<8x64xf32>
    %447 = arith.mulf %443, %446 : vector<8x64xf32>
    %cst_219 = arith.constant 0.000000e+00 : f32
    %448 = vector.broadcast %cst_219 : f32 to vector<8x64xf32>
    %449 = arith.cmpf oge, %447, %448 : vector<8x64xf32>
    %cst_220 = arith.constant 1.000000e+00 : f32
    %cst_221 = arith.constant -1.000000e+00 : f32
    %450 = vector.broadcast %cst_220 : f32 to vector<8x64xf32>
    %451 = vector.broadcast %cst_221 : f32 to vector<8x64xf32>
    %452 = arith.select %449, %450, %451 : vector<8x64xi1>, vector<8x64xf32>
    %453 = math.absf %447 : vector<8x64xf32>
    %cst_222 = arith.constant 0.327591091 : f32
    %454 = vector.broadcast %cst_222 : f32 to vector<8x64xf32>
    %455 = arith.mulf %454, %453 : vector<8x64xf32>
    %cst_223 = arith.constant 1.000000e+00 : f32
    %456 = vector.broadcast %cst_223 : f32 to vector<8x64xf32>
    %457 = arith.addf %456, %455 : vector<8x64xf32>
    %cst_224 = arith.constant 1.000000e+00 : f32
    %458 = vector.broadcast %cst_224 : f32 to vector<8x64xf32>
    %459 = arith.divf %458, %457 : vector<8x64xf32>
    %cst_225 = arith.constant 1.06140542 : f32
    %460 = vector.broadcast %cst_225 : f32 to vector<8x64xf32>
    %461 = arith.mulf %460, %459 : vector<8x64xf32>
    %cst_226 = arith.constant -1.45315206 : f32
    %462 = vector.broadcast %cst_226 : f32 to vector<8x64xf32>
    %463 = arith.addf %461, %462 : vector<8x64xf32>
    %464 = arith.mulf %463, %459 : vector<8x64xf32>
    %cst_227 = arith.constant 1.42141378 : f32
    %465 = vector.broadcast %cst_227 : f32 to vector<8x64xf32>
    %466 = arith.addf %464, %465 : vector<8x64xf32>
    %467 = arith.mulf %466, %459 : vector<8x64xf32>
    %cst_228 = arith.constant -0.284496725 : f32
    %468 = vector.broadcast %cst_228 : f32 to vector<8x64xf32>
    %469 = arith.addf %467, %468 : vector<8x64xf32>
    %470 = arith.mulf %469, %459 : vector<8x64xf32>
    %cst_229 = arith.constant 0.254829586 : f32
    %471 = vector.broadcast %cst_229 : f32 to vector<8x64xf32>
    %472 = arith.addf %470, %471 : vector<8x64xf32>
    %473 = arith.mulf %472, %459 : vector<8x64xf32>
    %474 = arith.mulf %453, %453 : vector<8x64xf32>
    %cst_230 = arith.constant 0.000000e+00 : f32
    %475 = vector.broadcast %cst_230 : f32 to vector<8x64xf32>
    %476 = arith.subf %475, %474 : vector<8x64xf32>
    %477 = math.exp %476 : vector<8x64xf32>
    %478 = arith.mulf %473, %477 : vector<8x64xf32>
    %cst_231 = arith.constant 1.000000e+00 : f32
    %479 = vector.broadcast %cst_231 : f32 to vector<8x64xf32>
    %480 = arith.subf %479, %478 : vector<8x64xf32>
    %481 = arith.mulf %452, %480 : vector<8x64xf32>
    %cst_232 = arith.constant 1.000000e+00 : f32
    %482 = vector.broadcast %cst_232 : f32 to vector<8x64xf32>
    %483 = arith.addf %482, %481 : vector<8x64xf32>
    %484 = arith.mulf %445, %483 : vector<8x64xf32>
    %485 = arith.addf %484, %413 : vector<8x64xf32>
    %c0_233 = arith.constant 0 : index
    %c0_234 = arith.constant 0 : index
    %486 = vector.load %arg29[%c0_233, %c0_234] : memref<64x32xbf16, #tpu.memory_space<vmem>>, vector<64x32xbf16>
    %487 = arith.truncf %485 : vector<8x64xf32> to vector<8x64xbf16>
    %cst_235 = arith.constant dense<0.000000e+00> : vector<8x32xf32>
    %488 = tpu.matmul %487, %486, %cst_235 {dimension_numbers = #tpu.dot_dimension_numbers<[1], [0], [0], [1], [0, 0, 1, 1], [], []>} : vector<8x64xbf16>, vector<64x32xbf16>, vector<8x32xf32> -> vector<8x32xf32>
    %c0_236 = arith.constant 0 : index
    %c0_237 = arith.constant 0 : index
    %489 = vector.load %arg30[%c0_236, %c0_237] : memref<1x32xf32, #tpu.memory_space<vmem>>, vector<1x32xf32>
    %490 = vector.broadcast %489 : vector<1x32xf32> to vector<8x32xf32>
    %491 = arith.addf %488, %490 : vector<8x32xf32>
    %c0_238 = arith.constant 0 : index
    %c0_239 = arith.constant 0 : index
    %492 = vector.load %arg31[%c0_238, %c0_239] : memref<1x32xf32, #tpu.memory_space<vmem>>, vector<1x32xf32>
    %c0_240 = arith.constant 0 : index
    %c0_241 = arith.constant 0 : index
    %493 = vector.load %arg32[%c0_240, %c0_241] : memref<1x32xf32, #tpu.memory_space<vmem>>, vector<1x32xf32>
    %cst_242 = arith.constant dense<0.000000e+00> : vector<8xf32>
    %494 = vector.multi_reduction <add>, %491, %cst_242 [1] : vector<8x32xf32> to vector<8xf32>
    %495 = vector.shape_cast %494 : vector<8xf32> to vector<8x1xf32>
    %cst_243 = arith.constant 3.200000e+01 : f32
    %496 = vector.broadcast %cst_243 : f32 to vector<8x1xf32>
    %497 = arith.divf %495, %496 : vector<8x1xf32>
    %498 = vector.broadcast %497 : vector<8x1xf32> to vector<8x32xf32>
    %499 = arith.subf %491, %498 : vector<8x32xf32>
    %500 = arith.mulf %499, %499 : vector<8x32xf32>
    %cst_244 = arith.constant dense<0.000000e+00> : vector<8xf32>
    %501 = vector.multi_reduction <add>, %500, %cst_244 [1] : vector<8x32xf32> to vector<8xf32>
    %502 = vector.shape_cast %501 : vector<8xf32> to vector<8x1xf32>
    %cst_245 = arith.constant 3.200000e+01 : f32
    %503 = vector.broadcast %cst_245 : f32 to vector<8x1xf32>
    %504 = arith.divf %502, %503 : vector<8x1xf32>
    %505 = vector.broadcast %497 : vector<8x1xf32> to vector<8x32xf32>
    %506 = arith.subf %491, %505 : vector<8x32xf32>
    %cst_246 = arith.constant 9.99999974E-6 : f32
    %507 = vector.broadcast %cst_246 : f32 to vector<8x1xf32>
    %508 = arith.addf %504, %507 : vector<8x1xf32>
    %509 = math.rsqrt %508 : vector<8x1xf32>
    %510 = vector.broadcast %509 : vector<8x1xf32> to vector<8x32xf32>
    %511 = arith.mulf %506, %510 : vector<8x32xf32>
    %512 = vector.broadcast %492 : vector<1x32xf32> to vector<8x32xf32>
    %513 = arith.mulf %511, %512 : vector<8x32xf32>
    %514 = vector.broadcast %493 : vector<1x32xf32> to vector<8x32xf32>
    %515 = arith.addf %513, %514 : vector<8x32xf32>
    %cst_247 = arith.constant 5.000000e-01 : f32
    %516 = vector.broadcast %cst_247 : f32 to vector<8x32xf32>
    %517 = arith.mulf %516, %515 : vector<8x32xf32>
    %cst_248 = arith.constant 0.707106769 : f32
    %518 = vector.broadcast %cst_248 : f32 to vector<8x32xf32>
    %519 = arith.mulf %515, %518 : vector<8x32xf32>
    %cst_249 = arith.constant 0.000000e+00 : f32
    %520 = vector.broadcast %cst_249 : f32 to vector<8x32xf32>
    %521 = arith.cmpf oge, %519, %520 : vector<8x32xf32>
    %cst_250 = arith.constant 1.000000e+00 : f32
    %cst_251 = arith.constant -1.000000e+00 : f32
    %522 = vector.broadcast %cst_250 : f32 to vector<8x32xf32>
    %523 = vector.broadcast %cst_251 : f32 to vector<8x32xf32>
    %524 = arith.select %521, %522, %523 : vector<8x32xi1>, vector<8x32xf32>
    %525 = math.absf %519 : vector<8x32xf32>
    %cst_252 = arith.constant 0.327591091 : f32
    %526 = vector.broadcast %cst_252 : f32 to vector<8x32xf32>
    %527 = arith.mulf %526, %525 : vector<8x32xf32>
    %cst_253 = arith.constant 1.000000e+00 : f32
    %528 = vector.broadcast %cst_253 : f32 to vector<8x32xf32>
    %529 = arith.addf %528, %527 : vector<8x32xf32>
    %cst_254 = arith.constant 1.000000e+00 : f32
    %530 = vector.broadcast %cst_254 : f32 to vector<8x32xf32>
    %531 = arith.divf %530, %529 : vector<8x32xf32>
    %cst_255 = arith.constant 1.06140542 : f32
    %532 = vector.broadcast %cst_255 : f32 to vector<8x32xf32>
    %533 = arith.mulf %532, %531 : vector<8x32xf32>
    %cst_256 = arith.constant -1.45315206 : f32
    %534 = vector.broadcast %cst_256 : f32 to vector<8x32xf32>
    %535 = arith.addf %533, %534 : vector<8x32xf32>
    %536 = arith.mulf %535, %531 : vector<8x32xf32>
    %cst_257 = arith.constant 1.42141378 : f32
    %537 = vector.broadcast %cst_257 : f32 to vector<8x32xf32>
    %538 = arith.addf %536, %537 : vector<8x32xf32>
    %539 = arith.mulf %538, %531 : vector<8x32xf32>
    %cst_258 = arith.constant -0.284496725 : f32
    %540 = vector.broadcast %cst_258 : f32 to vector<8x32xf32>
    %541 = arith.addf %539, %540 : vector<8x32xf32>
    %542 = arith.mulf %541, %531 : vector<8x32xf32>
    %cst_259 = arith.constant 0.254829586 : f32
    %543 = vector.broadcast %cst_259 : f32 to vector<8x32xf32>
    %544 = arith.addf %542, %543 : vector<8x32xf32>
    %545 = arith.mulf %544, %531 : vector<8x32xf32>
    %546 = arith.mulf %525, %525 : vector<8x32xf32>
    %cst_260 = arith.constant 0.000000e+00 : f32
    %547 = vector.broadcast %cst_260 : f32 to vector<8x32xf32>
    %548 = arith.subf %547, %546 : vector<8x32xf32>
    %549 = math.exp %548 : vector<8x32xf32>
    %550 = arith.mulf %545, %549 : vector<8x32xf32>
    %cst_261 = arith.constant 1.000000e+00 : f32
    %551 = vector.broadcast %cst_261 : f32 to vector<8x32xf32>
    %552 = arith.subf %551, %550 : vector<8x32xf32>
    %553 = arith.mulf %524, %552 : vector<8x32xf32>
    %cst_262 = arith.constant 1.000000e+00 : f32
    %554 = vector.broadcast %cst_262 : f32 to vector<8x32xf32>
    %555 = arith.addf %554, %553 : vector<8x32xf32>
    %556 = arith.mulf %517, %555 : vector<8x32xf32>
    %c0_263 = arith.constant 0 : index
    %c0_264 = arith.constant 0 : index
    %557 = vector.load %arg33[%c0_263, %c0_264] : memref<32x128xbf16, #tpu.memory_space<vmem>>, vector<32x128xbf16>
    %558 = arith.truncf %556 : vector<8x32xf32> to vector<8x32xbf16>
    %cst_265 = arith.constant dense<0.000000e+00> : vector<8x128xf32>
    %559 = tpu.matmul %558, %557, %cst_265 {dimension_numbers = #tpu.dot_dimension_numbers<[1], [0], [0], [1], [0, 0, 1, 1], [], []>} : vector<8x32xbf16>, vector<32x128xbf16>, vector<8x128xf32> -> vector<8x128xf32>
    %c0_266 = arith.constant 0 : index
    %c0_267 = arith.constant 0 : index
    %560 = vector.load %arg34[%c0_266, %c0_267] : memref<1x128xf32, #tpu.memory_space<vmem>>, vector<1x128xf32>
    %561 = vector.broadcast %560 : vector<1x128xf32> to vector<8x128xf32>
    %562 = arith.addf %559, %561 : vector<8x128xf32>
    %c0_268 = arith.constant 0 : index
    %c0_269 = arith.constant 0 : index
    %563 = vector.load %arg35[%c0_268, %c0_269] : memref<8x128xf32, #tpu.memory_space<vmem>>, vector<8x128xf32>
    tpu.vector_store %arg35[%c0_268, %c0_269], %562 {strides = array<i32>} : memref<8x128xf32, #tpu.memory_space<vmem>>, vector<8x128xf32>,
    return
  }
  func.func @transform_0(%arg0: i32) -> (i32, i32) {
    %c0_i32 = arith.constant 0 : i32
    %c0_i32_0 = arith.constant 0 : i32
    return %arg0, %c0_i32 : i32, i32
  }
  func.func @transform_1(%arg0: i32) -> (i32, i32) {
    %c0_i32 = arith.constant 0 : i32
    %c0_i32_0 = arith.constant 0 : i32
    %c0_i32_1 = arith.constant 0 : i32
    return %c0_i32, %c0_i32_0 : i32, i32
  }
  func.func @transform_2(%arg0: i32) -> (i32, i32) {
    %c0_i32 = arith.constant 0 : i32
    %c0_i32_0 = arith.constant 0 : i32
    %c0_i32_1 = arith.constant 0 : i32
    return %c0_i32, %c0_i32_0 : i32, i32
  }
  func.func @transform_3(%arg0: i32) -> (i32, i32) {
    %c0_i32 = arith.constant 0 : i32
    %c0_i32_0 = arith.constant 0 : i32
    %c0_i32_1 = arith.constant 0 : i32
    return %c0_i32, %c0_i32_0 : i32, i32
  }
  func.func @transform_4(%arg0: i32) -> (i32, i32) {
    %c0_i32 = arith.constant 0 : i32
    %c0_i32_0 = arith.constant 0 : i32
    %c0_i32_1 = arith.constant 0 : i32
    return %c0_i32, %c0_i32_0 : i32, i32
  }
  func.func @transform_5(%arg0: i32) -> (i32, i32) {
    %c0_i32 = arith.constant 0 : i32
    %c0_i32_0 = arith.constant 0 : i32
    %c0_i32_1 = arith.constant 0 : i32
    return %c0_i32, %c0_i32_0 : i32, i32
  }
  func.func @transform_6(%arg0: i32) -> (i32, i32) {
    %c0_i32 = arith.constant 0 : i32
    %c0_i32_0 = arith.constant 0 : i32
    %c0_i32_1 = arith.constant 0 : i32
    return %c0_i32, %c0_i32_0 : i32, i32
  }
  func.func @transform_7(%arg0: i32) -> (i32, i32) {
    %c0_i32 = arith.constant 0 : i32
    %c0_i32_0 = arith.constant 0 : i32
    %c0_i32_1 = arith.constant 0 : i32
    return %c0_i32, %c0_i32_0 : i32, i32
  }
  func.func @transform_8(%arg0: i32) -> (i32, i32) {
    %c0_i32 = arith.constant 0 : i32
    %c0_i32_0 = arith.constant 0 : i32
    %c0_i32_1 = arith.constant 0 : i32
    return %c0_i32, %c0_i32_0 : i32, i32
  }
  func.func @transform_9(%arg0: i32) -> (i32, i32) {
    %c0_i32 = arith.constant 0 : i32
    %c0_i32_0 = arith.constant 0 : i32
    %c0_i32_1 = arith.constant 0 : i32
    return %c0_i32, %c0_i32_0 : i32, i32
  }
  func.func @transform_10(%arg0: i32) -> (i32, i32, i32) {
    %c0_i32 = arith.constant 0 : i32
    %c0_i32_0 = arith.constant 0 : i32
    %c0_i32_1 = arith.constant 0 : i32
    %c0_i32_2 = arith.constant 0 : i32
    return %c0_i32, %c0_i32_0, %c0_i32_1 : i32, i32, i32
  }
  func.func @transform_11(%arg0: i32) -> (i32, i32, i32) {
    %c0_i32 = arith.constant 0 : i32
    %c0_i32_0 = arith.constant 0 : i32
    %c0_i32_1 = arith.constant 0 : i32
    %c0_i32_2 = arith.constant 0 : i32
    return %c0_i32, %c0_i32_0, %c0_i32_1 : i32, i32, i32
  }
  func.func @transform_12(%arg0: i32) -> (i32, i32, i32) {
    %c0_i32 = arith.constant 0 : i32
    %c0_i32_0 = arith.constant 0 : i32
    %c0_i32_1 = arith.constant 0 : i32
    %c0_i32_2 = arith.constant 0 : i32
    return %c0_i32, %c0_i32_0, %c0_i32_1 : i32, i32, i32
  }
  func.func @transform_13(%arg0: i32) -> (i32, i32, i32) {
    %c0_i32 = arith.constant 0 : i32
    %c0_i32_0 = arith.constant 0 : i32
    %c0_i32_1 = arith.constant 0 : i32
    %c0_i32_2 = arith.constant 0 : i32
    return %c0_i32, %c0_i32_0, %c0_i32_1 : i32, i32, i32
  }
  func.func @transform_14(%arg0: i32) -> (i32, i32, i32) {
    %c0_i32 = arith.constant 0 : i32
    %c0_i32_0 = arith.constant 0 : i32
    %c0_i32_1 = arith.constant 0 : i32
    %c0_i32_2 = arith.constant 0 : i32
    return %c0_i32, %c0_i32_0, %c0_i32_1 : i32, i32, i32
  }
  func.func @transform_15(%arg0: i32) -> (i32, i32, i32) {
    %c0_i32 = arith.constant 0 : i32
    %c0_i32_0 = arith.constant 0 : i32
    %c0_i32_1 = arith.constant 0 : i32
    %c0_i32_2 = arith.constant 0 : i32
    return %c0_i32, %c0_i32_0, %c0_i32_1 : i32, i32, i32
  }
  func.func @transform_16(%arg0: i32) -> (i32, i32, i32) {
    %c0_i32 = arith.constant 0 : i32
    %c0_i32_0 = arith.constant 0 : i32
    %c0_i32_1 = arith.constant 0 : i32
    %c0_i32_2 = arith.constant 0 : i32
    return %c0_i32, %c0_i32_0, %c0_i32_1 : i32, i32, i32
  }
  func.func @transform_17(%arg0: i32) -> (i32, i32, i32) {
    %c0_i32 = arith.constant 0 : i32
    %c0_i32_0 = arith.constant 0 : i32
    %c0_i32_1 = arith.constant 0 : i32
    %c0_i32_2 = arith.constant 0 : i32
    return %c0_i32, %c0_i32_0, %c0_i32_1 : i32, i32, i32
  }
  func.func @transform_18(%arg0: i32) -> (i32, i32, i32) {
    %c0_i32 = arith.constant 0 : i32
    %c0_i32_0 = arith.constant 0 : i32
    %c0_i32_1 = arith.constant 0 : i32
    %c0_i32_2 = arith.constant 0 : i32
    return %c0_i32, %c0_i32_0, %c0_i32_1 : i32, i32, i32
  }
  func.func @transform_19(%arg0: i32) -> (i32, i32, i32) {
    %c0_i32 = arith.constant 0 : i32
    %c0_i32_0 = arith.constant 0 : i32
    %c0_i32_1 = arith.constant 0 : i32
    %c0_i32_2 = arith.constant 0 : i32
    return %c0_i32, %c0_i32_0, %c0_i32_1 : i32, i32, i32
  }
  func.func @transform_20(%arg0: i32) -> (i32, i32, i32) {
    %c0_i32 = arith.constant 0 : i32
    %c0_i32_0 = arith.constant 0 : i32
    %c0_i32_1 = arith.constant 0 : i32
    %c0_i32_2 = arith.constant 0 : i32
    return %c0_i32, %c0_i32_0, %c0_i32_1 : i32, i32, i32
  }
  func.func @transform_21(%arg0: i32) -> (i32, i32, i32) {
    %c0_i32 = arith.constant 0 : i32
    %c0_i32_0 = arith.constant 0 : i32
    %c0_i32_1 = arith.constant 0 : i32
    %c0_i32_2 = arith.constant 0 : i32
    return %c0_i32, %c0_i32_0, %c0_i32_1 : i32, i32, i32
  }
  func.func @transform_22(%arg0: i32) -> (i32, i32) {
    %c0_i32 = arith.constant 0 : i32
    %c0_i32_0 = arith.constant 0 : i32
    %c0_i32_1 = arith.constant 0 : i32
    return %c0_i32, %c0_i32_0 : i32, i32
  }
  func.func @transform_23(%arg0: i32) -> (i32, i32) {
    %c0_i32 = arith.constant 0 : i32
    %c0_i32_0 = arith.constant 0 : i32
    %c0_i32_1 = arith.constant 0 : i32
    return %c0_i32, %c0_i32_0 : i32, i32
  }
  func.func @transform_24(%arg0: i32) -> (i32, i32) {
    %c0_i32 = arith.constant 0 : i32
    %c0_i32_0 = arith.constant 0 : i32
    %c0_i32_1 = arith.constant 0 : i32
    return %c0_i32, %c0_i32_0 : i32, i32
  }
  func.func @transform_25(%arg0: i32) -> (i32, i32) {
    %c0_i32 = arith.constant 0 : i32
    %c0_i32_0 = arith.constant 0 : i32
    %c0_i32_1 = arith.constant 0 : i32
    return %c0_i32, %c0_i32_0 : i32, i32
  }
  func.func @transform_26(%arg0: i32) -> (i32, i32) {
    %c0_i32 = arith.constant 0 : i32
    %c0_i32_0 = arith.constant 0 : i32
    %c0_i32_1 = arith.constant 0 : i32
    return %c0_i32, %c0_i32_0 : i32, i32
  }
  func.func @transform_27(%arg0: i32) -> (i32, i32) {
    %c0_i32 = arith.constant 0 : i32
    %c0_i32_0 = arith.constant 0 : i32
    %c0_i32_1 = arith.constant 0 : i32
    return %c0_i32, %c0_i32_0 : i32, i32
  }
  func.func @transform_28(%arg0: i32) -> (i32, i32) {
    %c0_i32 = arith.constant 0 : i32
    %c0_i32_0 = arith.constant 0 : i32
    %c0_i32_1 = arith.constant 0 : i32
    return %c0_i32, %c0_i32_0 : i32, i32
  }
  func.func @transform_29(%arg0: i32) -> (i32, i32) {
    %c0_i32 = arith.constant 0 : i32
    %c0_i32_0 = arith.constant 0 : i32
    %c0_i32_1 = arith.constant 0 : i32
    return %c0_i32, %c0_i32_0 : i32, i32
  }
  func.func @transform_30(%arg0: i32) -> (i32, i32) {
    %c0_i32 = arith.constant 0 : i32
    %c0_i32_0 = arith.constant 0 : i32
    %c0_i32_1 = arith.constant 0 : i32
    return %c0_i32, %c0_i32_0 : i32, i32
  }
  func.func @transform_31(%arg0: i32) -> (i32, i32) {
    %c0_i32 = arith.constant 0 : i32
    %c0_i32_0 = arith.constant 0 : i32
    %c0_i32_1 = arith.constant 0 : i32
    return %c0_i32, %c0_i32_0 : i32, i32
  }
  func.func @transform_32(%arg0: i32) -> (i32, i32) {
    %c0_i32 = arith.constant 0 : i32
    %c0_i32_0 = arith.constant 0 : i32
    %c0_i32_1 = arith.constant 0 : i32
    return %c0_i32, %c0_i32_0 : i32, i32
  }
  func.func @transform_33(%arg0: i32) -> (i32, i32) {
    %c0_i32 = arith.constant 0 : i32
    %c0_i32_0 = arith.constant 0 : i32
    %c0_i32_1 = arith.constant 0 : i32
    return %c0_i32, %c0_i32_0 : i32, i32
  }
  func.func @transform_34(%arg0: i32) -> (i32, i32) {
    %c0_i32 = arith.constant 0 : i32
    %c0_i32_0 = arith.constant 0 : i32
    return %arg0, %c0_i32 : i32, i32
  }
}

</mosaic_0001>

<bundles_post_ra>
// kernel: imputation_forward.1
= control target key start
LH: loop header
LB: loop body
LE: loop exit
PB: predicated region body
PF: predicated region fallthrough
CT: control target
= control target key end

     0   :  { %s2456_s3 = smov 1   ;;  %s2457_s10 = smov 2   ;;  %vm157_vm0 = vcmask 130048   ;;  %vm176_vm1 = vcmask 523264   ;;  %v2458_v8 = vmov 64.0   ;;  %s2865_s0 = inlined_call_operand.smem [shape: u32[35], index: -1, kind: input, shape index: {}] }
   0x1   :  { %s1789_s6 = sld [smem:[%s2865_s0 + %s2456_s3]]   ;;  %2402 = vrcp.f32 %v2458_v8  ;;  %s2459_s14 = smov 3  }
   0x2   :  { %s1_s9 = sld [smem:[%s2865_s0]]   ;;  %s2460_s18 = smov 4  }
   0x3   :  { %s1790_s13 = sld [smem:[%s2865_s0 + %s2457_s10]]   ;;  %s2461_s22 = smov 6  }
   0x4   :  { %s1791_s17 = sld [smem:[%s2865_s0 + %s2459_s14]]   ;;  %s2462_s26 = smov 5  }
   0x5   :  { %s1792_s21 = sld [smem:[%s2865_s0 + %s2460_s18]]   ;;  %s2464_s30 = smov 7  }
   0x6   :  { %s2521_s25 = sld [smem:[%s2865_s0 + %s2461_s22]]   ;;  %s2465_s4 = smov 8  }
   0x7   :  { %v2250_v0 = vld [vmem:[%s1789_s6] sm:$0xff]  ;;  %v2403_v9 = vpop.eup %2402  ;;  %s1793_s29 = sld [smem:[%s2865_s0 + %s2462_s26]]   ;;  %s2466_s8 = smov 9  }
   0x8   :  { %v143_v1 = vld [vmem:[%s1_s9] sm:$0xff]  ;;  %168 = vmatpush.bf16.msra.mxu0 %v2250_v0  ;;  %v181_v10 = vmul.f32 64.0, %v2403_v9  ;;  %vm185_vm2 = vweird.f32 %v2403_v9  ;;  %s2533_s3 = sld [smem:[%s2865_s0 + %s2464_s30]]   ;;  %s2467_s12 = smov 11  }
   0x9   :  { %v146_v2 = vpack.c.bf16 %v143_v1, %v143_v1  ;;  %v2374_v3 = vld [vmem:[%s1790_s13] ss:$0 sm:$0xff]  ;;  %s2538_s7 = sld [smem:[%s2865_s0 + %s2465_s4]]   ;;  %s2468_s16 = smov 10  }
   0xa   :  { %v182_v11 = vsub.f32 1.0, %v181_v10  ;;  %v2375_v33 = vld [vmem:[%s1791_s17] ss:$0 sm:$0xff]  ;;  %s2546_s11 = sld [smem:[%s2865_s0 + %s2466_s8]]   ;;  %s2469_s20 = smov 12  }
   0xb   :  { %1827 = vmatmul.msk.bf16.vlgmr.msra.gmra.mxu0 %vm157_vm0, %v146_v2  ;;  %v2376_v36 = vld [vmem:[%s1792_s21] ss:$0 sm:$0xff]  ;;  %s2551_s15 = sld [smem:[%s2865_s0 + %s2467_s12]]   ;;  %s2470_s24 = smov 13  }
   0xc   :  { %v183_v12 = vmul.f32 %v2403_v9, %v182_v11  ;;  %v2377_v11 = vld [vmem:[%s2521_s25] ss:$0 sm:$0xff]  ;;  %s2557_s19 = sld [smem:[%s2865_s0 + %s2468_s16]]   ;;  %s2471_s28 = smov 14  }
   0xd   :  { %v2254_v20 = vld [vmem:[%s1793_s29 + $0x18] sm:$0xff]  ;;  %v2253_v21 = vld [vmem:[%s1793_s29 + $0x10] sm:$0xff]  ;;  %v2252_v22 = vld [vmem:[%s1793_s29 + $0x8] sm:$0xff]  ;;  %s2568_s23 = sld [smem:[%s2865_s0 + %s2469_s20]]   ;;  %s2472_s2 = smov 15  }
   0xe   :  { %v184_v13 = vadd.f32 %v2403_v9, %v183_v12  ;;  %298 = vmatpush.bf16.msra.mxu1 %v2254_v20  ;;  %v2251_v25 = vld [vmem:[%s1793_s29] sm:$0xff]  ;;  %s2583_s27 = sld [smem:[%s2865_s0 + %s2470_s24]]   ;;  %s2473_s8 = smov 16  }
   0xf   :  { %s2596_s1 = sld [smem:[%s2865_s0 + %s2471_s28]]   ;;  %s2474_s12 = smov 19  }
  0x10   :  { %v2508_v14 = vsel %vm185_vm2, %v2403_v9, %v184_v13  ;;  %s2601_s6 = sld [smem:[%s2865_s0 + %s2472_s2]]   ;;  %s2475_s17 = smov 17  }
  0x11   :  { %s2636_s16 = sld [smem:[%s2865_s0 + %s2474_s12]]   ;;  %s2476_s22 = smov 18  }
  0x12   :  { %299 = vmatpush.bf16.msra.mxu1 %v2253_v21  ;;  %s2641_s21 = sld [smem:[%s2865_s0 + %s2475_s17]]   ;;  %s2477_s28 = smov 20  }
  0x13   :  { %s2646_s26 = sld [smem:[%s2865_s0 + %s2476_s22]]   ;;  %s2478_s4 = smov 21  }
  0x14   :  { %s2687_s2 = sld [smem:[%s2865_s0 + %s2477_s28]]   ;;  %s2481_s12 = smov 24  }
  0x15   :  { %s2693_s9 = sld [smem:[%s2865_s0 + %s2478_s4]]   ;;  %s2482_s17 = smov 25  }
  0x16   :  { %300 = vmatpush.bf16.msra.mxu1 %v2252_v22  ;;  %s2483_s22 = smov 26   ;;  %s2484_s28 = smov 27  }
  0x17   :  { %s2485_s4 = smov 29   ;;  %s2488_s10 = smov 31  }
  0x18   :  { %s2845_s13 = sld [smem:[%s2865_s0 + %s2488_s10]]   ;;  %s2490_s14 = smov 33  }
  0x19   :  { %s2852_s18 = sld [smem:[%s2865_s0 + %s2490_s14]]   ;;  %s2491_s20 = smov 32  }
  0x1a   :  { %301 = vmatpush.bf16.msra.mxu1 %v2251_v25  ;;  %s1820_s24 = sld [smem:[%s2865_s0 + %s2491_s20]]   ;;  %s2492_s25 = smov 34  }
  0x1b   :  { %s1822_s29 = sld [smem:[%s2865_s0 + %s2492_s25]]  }
  0x88   :  { %v170_v4 = vpop.f32.mrf.mxu0 }
  0x89   :  { %v171_v5 = vadd.f32 %v2374_v3, %v170_v4  ;;  %v2463_v4 = vmov -1.0  }
  0x8b   :  { %v177_v6 = vsel %vm176_vm1, %v171_v5, 0.0 }
  0x8c   :  { %178 = vadd.xlane.f32.xlu0 %v177_v6 }
  0x90   :  { %v172_v7 = vpop.f32.mrf.mxu0 }
  0xff   :  { %v179_v15 = vpop.xlane.xlu0 %178 }
 0x100   :  { %v187_v16 = vmul.f32 %v2508_v14, %v179_v15 }
 0x102   :  { %v188_v17 = vsub.f32 %v171_v5, %v187_v16 }
 0x104   :  { %v189_v18 = vmul.f32 %v188_v17, %v188_v17 }
 0x106   :  { %v190_v19 = vsel %vm176_vm1, %v189_v18, 0.0 }
 0x107   :  { %191 = vadd.xlane.f32.xlu0 %v190_v19 }
 0x17a   :  { %v192_v23 = vpop.xlane.xlu0 %191 }
 0x17b   :  { %v193_v24 = vmul.f32 %v192_v23, %v2508_v14 }
 0x17d   :  { %v194_v26 = vadd.f32 1e-05, %v193_v24 }
 0x17f   :  { %2404 = vrsqrt.f32 %v194_v26  ;;  %vm201_vm4 = vweird.f32 %v194_v26 }
 0x185   :  { %v2405_v27 = vpop.eup %2404 }
 0x186   :  { %v196_v28 = vmul.f32 %v2405_v27, %v194_v26  ;;  %vm202_vm3 = vweird.f32 %v2405_v27 }
 0x187   :  { %vm203_vm5 = vmor %vm201_vm4, %vm202_vm3 }
 0x188   :  { %v197_v29 = vmul.f32 %v2405_v27, %v196_v28  ;;  %v2258_v28 = vld [vmem:[%s2557_s19 + $0x18] sm:$0xff] }
 0x189   :  { %428 = vmatpush.bf16.msra.mxu2 %v2258_v28 }
 0x18a   :  { %v198_v30 = vmul.f32 0.5, %v197_v29 }
 0x18c   :  { %v199_v31 = vsub.f32 1.5, %v198_v30  ;;  %v2257_v30 = vld [vmem:[%s2557_s19 + $0x10] sm:$0xff] }
 0x18d   :  { %429 = vmatpush.bf16.msra.mxu2 %v2257_v30 }
 0x18e   :  { %v200_v32 = vmul.f32 %v2405_v27, %v199_v31 }
 0x190   :  { %v204_v34 = vsel %vm203_vm5, %v2405_v27, %v200_v32 }
 0x191   :  { %v205_v35 = vmul.f32 %v204_v34, %v188_v17  ;;  %v2378_v34 = vld [vmem:[%s2533_s3] ss:$0 sm:$0xff] }
 0x193   :  { %v209_v37 = vmul.f32 %v2375_v33, %v205_v35  ;;  %v2256_v33 = vld [vmem:[%s2557_s19 + $0x8] sm:$0xff] }
 0x194   :  { %430 = vmatpush.bf16.msra.mxu2 %v2256_v33 }
 0x195   :  { %v213_v38 = vadd.f32 %v2376_v36, %v209_v37  ;;  %v2379_v36 = vld [vmem:[%s2538_s7] ss:$0 sm:$0xff] }
 0x197   :  { %v215_v39 = vmul.f32 0.70710677, %v213_v38  ;;  %v214_v7 = vmul.f32 0.5, %v213_v38  ;;  %v2255_v38 = vld [vmem:[%s2557_s19] sm:$0xff] }
 0x198   :  { %431 = vmatpush.bf16.msra.mxu2 %v2255_v38 }
 0x199   :  { %v218_v40 = vand.u32 2147483647, %v215_v39  ;;  %vm216_vm10 = vcmp.ge.f32.partialorder %v215_v39, 0.0 }
 0x19a   :  { %v217_v5 = vsel %vm216_vm10, 1.0, %v2463_v4 }
 0x19b   :  { %v219_v41 = vmul.f32 0.3275911, %v218_v40  ;;  %v245_v53 = vmul.f32 %v218_v40, %v218_v40 }
 0x19d   :  { %v220_v42 = vadd.f32 1.0, %v219_v41  ;;  %v246_v56 = vsub.f32 0.0, %v245_v53 }
 0x19f   :  { %2406 = vrcp.f32 %v220_v42  ;;  %v232_v46 = vand.u32 2147483648, %v220_v42  ;;  %v230_v48 = vand.u32 2147483647, %v220_v42  ;;  %vm226_vm7 = vweird.f32 %v220_v42 }
 0x1a0   :  { %v247_v59 = vmul.f32 1.442695, %v246_v56 }
 0x1a1   :  { %v233_v50 = vor.u32 1.1754944e-38, %v232_v46  ;;  %vm231_vm9 = vcmp.eq.f32.partialorder %v230_v48, 8.507059e+37 }
 0x1a2   :  { %2408 = vpow2.f32 %v247_v59  ;;  %v2261_v59 = vld [vmem:[%s2568_s23 + $0x10] sm:$0xff] }
 0x1a5   :  { %v2407_v43 = vpop.eup %2406 }
 0x1a6   :  { %v222_v44 = vmul.f32 %v2407_v43, %v220_v42  ;;  %vm227_vm6 = vweird.f32 %v2407_v43 }
 0x1a7   :  { %vm228_vm8 = vmor %vm226_vm7, %vm227_vm6 }
 0x1a8   :  { %v223_v45 = vsub.f32 1.0, %v222_v44  ;;  %v2409_v1 = vpop.eup %2408 }
 0x1aa   :  { %v224_v47 = vmul.f32 %v2407_v43, %v223_v45 }
 0x1ac   :  { %v225_v49 = vadd.f32 %v2407_v43, %v224_v47 }
 0x1ae   :  { %v229_v51 = vsel %vm228_vm8, %v2407_v43, %v225_v49 }
 0x1af   :  { %v234_v52 = vsel %vm231_vm9, %v233_v50, %v229_v51 }
 0x1b0   :  { %v236_v54 = vmul.f32 1.0614054, %v234_v52 }
 0x1b2   :  { %v237_v55 = vadd.f32 -1.4531521, %v236_v54 }
 0x1b4   :  { %v238_v57 = vmul.f32 %v237_v55, %v234_v52 }
 0x1b6   :  { %v239_v58 = vadd.f32 1.4214138, %v238_v57  ;;  %v2262_v57 = vld [vmem:[%s2568_s23 + $0x18] sm:$0xff] }
 0x1b7   :  { %481 = vmatpush.bf16.msra.mxu3 %v2262_v57 }
 0x1b8   :  { %v240_v60 = vmul.f32 %v239_v58, %v234_v52 }
 0x1ba   :  { %v241_v61 = vadd.f32 -0.28449672, %v240_v60 }
 0x1bb   :  { %482 = vmatpush.bf16.msra.mxu3 %v2261_v59 }
 0x1bc   :  { %v242_v62 = vmul.f32 %v241_v61, %v234_v52 }
 0x1be   :  { %v243_v63 = vadd.f32 0.2548296, %v242_v62 }
 0x1c0   :  { %v244_v0 = vmul.f32 %v243_v63, %v234_v52  ;;  %v2260_v63 = vld [vmem:[%s2568_s23 + $0x8] sm:$0xff] }
 0x1c1   :  { %483 = vmatpush.bf16.msra.mxu3 %v2260_v63 }
 0x1c2   :  { %v249_v2 = vmul.f32 %v2409_v1, %v244_v0 }
 0x1c4   :  { %v250_v3 = vsub.f32 1.0, %v249_v2 }
 0x1c6   :  { %v251_v6 = vmul.f32 %v250_v3, %v217_v5 }
 0x1c8   :  { %v252_v8 = vadd.f32 1.0, %v251_v6 }
 0x1ca   :  { %v253_v9 = vmul.f32 %v252_v8, %v214_v7 }
 0x1cc   :  { %v262_v10 = vpack.c.bf16 %v253_v9, %v253_v9 }
 0x1ce   :  { %1844 = vmatmul.msk.bf16.vlgmr.msra.gmra.mxu1 %vm176_vm1, %v262_v10 }
 0x24b   :  { %v303_v12 = vpop.f32.mrf.mxu1 }
 0x24c   :  { %v304_v13 = vadd.f32 %v2377_v11, %v303_v12 }
 0x24e   :  { %v309_v15 = vsel %vm176_vm1, %v304_v13, 0.0 }
 0x24f   :  { %310 = vadd.xlane.f32.xlu1 %v309_v15  ;;  %v2380_v15 = vld [vmem:[%s2546_s11] ss:$0 sm:$0xff]  ;;  %s2606_s11 = sld [smem:[%s2865_s0 + %s2473_s8]]  }
 0x253   :  { %v305_v16 = vpop.f32.mrf.mxu1 }
 0x255   :  { %v2269_v38 = vld [vmem:[%s2606_s11 + $0x34] sm:$0xf]  ;;  %v1883_v57 = vld [vmem:[%s2606_s11 + $0x8] sm:$0xf0] }
 0x2c2   :  { %v311_v17 = vpop.xlane.xlu1 %310 }
 0x2c3   :  { %v312_v18 = vmul.f32 %v311_v17, %v2508_v14 }
 0x2c5   :  { %v313_v19 = vsub.f32 %v304_v13, %v312_v18 }
 0x2c7   :  { %v314_v20 = vmul.f32 %v313_v19, %v313_v19 }
 0x2c9   :  { %v315_v21 = vsel %vm176_vm1, %v314_v20, 0.0  ;;  %v2381_v20 = vld [vmem:[%s2551_s15] ss:$0 sm:$0xff] }
 0x2ca   :  { %316 = vadd.xlane.f32.xlu1 %v315_v21 }
 0x33d   :  { %v317_v22 = vpop.xlane.xlu1 %316 }
 0x33e   :  { %v318_v23 = vmul.f32 %v317_v22, %v2508_v14 }
 0x340   :  { %v319_v24 = vadd.f32 1e-05, %v318_v23 }
 0x342   :  { %2410 = vrsqrt.f32 %v319_v24  ;;  %vm326_vm12 = vweird.f32 %v319_v24 }
 0x348   :  { %v2411_v25 = vpop.eup %2410 }
 0x349   :  { %v321_v26 = vmul.f32 %v2411_v25, %v319_v24  ;;  %vm327_vm11 = vweird.f32 %v2411_v25 }
 0x34a   :  { %vm328_vm13 = vmor %vm326_vm12, %vm327_vm11 }
 0x34b   :  { %v322_v27 = vmul.f32 %v2411_v25, %v321_v26 }
 0x34d   :  { %v323_v29 = vmul.f32 0.5, %v322_v27 }
 0x34f   :  { %v324_v31 = vsub.f32 1.5, %v323_v29 }
 0x351   :  { %v325_v32 = vmul.f32 %v2411_v25, %v324_v31 }
 0x353   :  { %v329_v35 = vsel %vm328_vm13, %v2411_v25, %v325_v32  ;;  %v2382_v25 = vld [vmem:[%s2583_s27] ss:$0 sm:$0xff] }
 0x354   :  { %v330_v37 = vmul.f32 %v329_v35, %v313_v19  ;;  %v2259_v19 = vld [vmem:[%s2568_s23] sm:$0xff] }
 0x355   :  { %484 = vmatpush.bf16.msra.mxu3 %v2259_v19 }
 0x356   :  { %v334_v39 = vmul.f32 %v2378_v34, %v330_v37  ;;  %v2270_v37 = vld [vmem:[%s2606_s11 + $0x34] sm:$0xf0] }
 0x358   :  { %v338_v40 = vadd.f32 %v2379_v36, %v334_v39  ;;  %v1905_v36 = vld [vmem:[%s2606_s11 + $0x30] sm:$0xf] }
 0x359   :  { %v1906_v39 = vor.u32 %v2270_v37, %v1905_v36 }
 0x35a   :  { %v340_v41 = vmul.f32 0.70710677, %v338_v40  ;;  %v339_v12 = vmul.f32 0.5, %v338_v40  ;;  %v1907_v40 = vld [vmem:[%s2606_s11 + $0x38] sm:$0xf0] }
 0x35b   :  { %585 = vmatpush.bf16.msrb.mxu0 %v1906_v39 }
 0x35c   :  { %v343_v42 = vand.u32 2147483647, %v340_v41  ;;  %vm341_vm3 = vcmp.ge.f32.partialorder %v340_v41, 0.0  ;;  %v1910_v41 = vor.u32 %v2269_v38, %v1907_v40  ;;  %v2274_v40 = vld [vmem:[%s2646_s26 + $0x18] sm:$0xff] }
 0x35d   :  { %v342_v10 = vsel %vm341_vm3, 1.0, %v2463_v4 }
 0x35e   :  { %v344_v43 = vmul.f32 0.3275911, %v343_v42  ;;  %v370_v54 = vmul.f32 %v343_v42, %v343_v42  ;;  %598 = vmatpush.bf16.msrb.mxu1 %v1910_v41  ;;  %v1897_v42 = vld [vmem:[%s2606_s11 + $0x20] sm:$0xf]  ;;  %v2282_v41 = vld [vmem:[%s2646_s26 + $0x58] sm:$0xff] }
 0x360   :  { %v345_v44 = vadd.f32 1.0, %v344_v43  ;;  %v371_v60 = vsub.f32 0.0, %v370_v54  ;;  %v2268_v43 = vld [vmem:[%s2606_s11 + $0x24] sm:$0xf0] }
 0x361   :  { %v2264_v54 = vld [vmem:[%s2606_s11 + $0x4] sm:$0xf0] }
 0x362   :  { %2412 = vrcp.f32 %v345_v44  ;;  %v357_v48 = vand.u32 2147483648, %v345_v44  ;;  %v355_v50 = vand.u32 2147483647, %v345_v44  ;;  %vm351_vm15 = vweird.f32 %v345_v44 }
 0x363   :  { %v372_v0 = vmul.f32 1.442695, %v371_v60 }
 0x364   :  { %v358_v52 = vor.u32 1.1754944e-38, %v357_v48  ;;  %vm356_vm2 = vcmp.eq.f32.partialorder %v355_v50, 8.507059e+37  ;;  %v1889_v48 = vld [vmem:[%s2606_s11 + $0x10] sm:$0xf]  ;;  %v2265_v50 = vld [vmem:[%s2606_s11 + $0x14] sm:$0xf] }
 0x365   :  { %2414 = vpow2.f32 %v372_v0 }
 0x368   :  { %v2413_v45 = vpop.eup %2412 }
 0x369   :  { %v347_v46 = vmul.f32 %v2413_v45, %v345_v44  ;;  %vm352_vm14 = vweird.f32 %v2413_v45  ;;  %v2267_v44 = vld [vmem:[%s2606_s11 + $0x24] sm:$0xf] }
 0x36a   :  { %vm353_vm0 = vmor %vm351_vm15, %vm352_vm14 }
 0x36b   :  { %v348_v47 = vsub.f32 1.0, %v347_v46  ;;  %v2415_v7 = vpop.eup %2414  ;;  %v1899_v46 = vld [vmem:[%s2606_s11 + $0x28] sm:$0xf0] }
 0x36d   :  { %v349_v49 = vmul.f32 %v2413_v45, %v348_v47  ;;  %v1902_v47 = vor.u32 %v2267_v44, %v1899_v46 }
 0x36f   :  { %v350_v51 = vadd.f32 %v2413_v45, %v349_v49  ;;  %599 = vmatpush.bf16.msrb.mxu1 %v1902_v47  ;;  %v2266_v49 = vld [vmem:[%s2606_s11 + $0x14] sm:$0xf0] }
 0x371   :  { %v354_v53 = vsel %vm353_vm0, %v2413_v45, %v350_v51  ;;  %v1898_v45 = vor.u32 %v2268_v43, %v1897_v42  ;;  %v1890_v51 = vor.u32 %v2266_v49, %v1889_v48  ;;  %v2273_v42 = vld [vmem:[%s2646_s26 + $0x10] sm:$0xff]  ;;  %v2272_v48 = vld [vmem:[%s2646_s26 + $0x8] sm:$0xff] }
 0x372   :  { %v359_v55 = vsel %vm356_vm2, %v358_v52, %v354_v53  ;;  %v1891_v52 = vld [vmem:[%s2606_s11 + $0x18] sm:$0xf0]  ;;  %v1881_v53 = vld [vmem:[%s2606_s11] sm:$0xf]  ;;  %v2281_v43 = vld [vmem:[%s2646_s26 + $0x50] sm:$0xff] }
 0x373   :  { %v361_v56 = vmul.f32 1.0614054, %v359_v55  ;;  %586 = vmatpush.bf16.msrb.mxu0 %v1898_v45  ;;  %v2280_v49 = vld [vmem:[%s2646_s26 + $0x48] sm:$0xff] }
 0x375   :  { %v362_v58 = vadd.f32 -1.4531521, %v361_v56  ;;  %v2263_v56 = vld [vmem:[%s2606_s11 + $0x4] sm:$0xf] }
 0x376   :  { %v1886_v59 = vor.u32 %v2263_v56, %v1883_v57  ;;  %v2271_v56 = vld [vmem:[%s2646_s26] sm:$0xff] }
 0x377   :  { %v363_v61 = vmul.f32 %v362_v58, %v359_v55  ;;  %587 = vmatpush.bf16.msrb.mxu0 %v1890_v51  ;;  %v1882_v58 = vor.u32 %v2264_v54, %v1881_v53  ;;  %v2279_v57 = vld [vmem:[%s2646_s26 + $0x40] sm:$0xff] }
 0x379   :  { %v364_v62 = vadd.f32 1.4214138, %v363_v61 }
 0x37b   :  { %v365_v1 = vmul.f32 %v364_v62, %v359_v55  ;;  %588 = vmatpush.bf16.msrb.mxu0 %v1882_v58 }
 0x37d   :  { %v366_v2 = vadd.f32 -0.28449672, %v365_v1 }
 0x37f   :  { %v367_v3 = vmul.f32 %v366_v2, %v359_v55 }
 0x381   :  { %v368_v5 = vadd.f32 0.2548296, %v367_v3 }
 0x383   :  { %v369_v6 = vmul.f32 %v368_v5, %v359_v55  ;;  %v1894_v55 = vor.u32 %v2265_v50, %v1891_v52 }
 0x385   :  { %v374_v8 = vmul.f32 %v2415_v7, %v369_v6  ;;  %600 = vmatpush.bf16.msrb.mxu1 %v1894_v55  ;;  %v2383_v6 = vld [vmem:[%s2596_s1] ss:$0 sm:$0xff] }
 0x387   :  { %v375_v9 = vsub.f32 1.0, %v374_v8 }
 0x389   :  { %v376_v11 = vmul.f32 %v375_v9, %v342_v10  ;;  %601 = vmatpush.bf16.msrb.mxu1 %v1886_v59  ;;  %v2384_v9 = vld [vmem:[%s2601_s6] ss:$0 sm:$0xff] }
 0x38b   :  { %v377_v13 = vadd.f32 1.0, %v376_v11 }
 0x38d   :  { %v378_v16 = vmul.f32 %v377_v13, %v339_v12  ;;  %v532_v13 = vld [vmem:[%s2641_s21] sm:$0x3] }
 0x38e   :  { %v535_v19 = vperm.slane %v532_v13, 1 }
 0x38f   :  { %v2575_v17 = vadd.f32 %v2380_v15, %v378_v16  ;;  %v2278_v15 = vld [vmem:[%s2646_s26 + $0x38] sm:$0xff] }
 0x390   :  { %v2286_v16 = vld [vmem:[%s2646_s26 + $0x78] sm:$0xff]  ;;  %821 = vmatpush.bf16.msrb.mxu2 %v2278_v15 }
 0x391   :  { %v392_v18 = vpack.c.bf16 %v2575_v17, %v2575_v17  ;;  %834 = vmatpush.bf16.msrb.mxu3 %v2286_v16 }
 0x393   :  { %1861 = vmatmul.msk.bf16.vlgmr.msra.gmra.mxu2 %vm176_vm1, %v392_v18  ;;  %v534_v18 = vperm.slane %v532_v13, 0 }
 0x416   :  { %v433_v21 = vpop.f32.mrf.mxu2 }
 0x417   :  { %v434_v22 = vadd.f32 %v2381_v20, %v433_v21  ;;  %v2277_v20 = vld [vmem:[%s2646_s26 + $0x30] sm:$0xff] }
 0x418   :  { %v2285_v21 = vld [vmem:[%s2646_s26 + $0x70] sm:$0xff]  ;;  %822 = vmatpush.bf16.msrb.mxu2 %v2277_v20 }
 0x419   :  { %v445_v23 = vpack.c.bf16 %v434_v22, %v434_v22  ;;  %835 = vmatpush.bf16.msrb.mxu3 %v2285_v21 }
 0x41b   :  { %1878 = vmatmul.msk.bf16.vlgmr.msra.gmra.mxu3 %vm176_vm1, %v445_v23 }
 0x41e   :  { %v435_v24 = vpop.f32.mrf.mxu2 }
 0x49e   :  { %v486_v26 = vpop.f32.mrf.mxu3 }
 0x49f   :  { %v487_v27 = vadd.f32 %v2382_v25, %v486_v26 }
 0x4a1   :  { %v490_v28 = vadd.f32 %v487_v27, %v2575_v17 }
 0x4a3   :  { %v493_v29 = vsel %vm176_vm1, %v490_v28, 0.0 }
 0x4a4   :  { %494 = vadd.xlane.f32.xlu2 %v493_v29  ;;  %v2284_v29 = vld [vmem:[%s2646_s26 + $0x68] sm:$0xff] }
 0x4a5   :  { %836 = vmatpush.bf16.msrb.mxu3 %v2284_v29 }
 0x4a6   :  { %v488_v30 = vpop.f32.mrf.mxu3 }
 0x517   :  { %v495_v31 = vpop.xlane.xlu2 %494 }
 0x518   :  { %v496_v32 = vmul.f32 %v495_v31, %v2508_v14 }
 0x51a   :  { %v497_v33 = vsub.f32 %v490_v28, %v496_v32  ;;  %v2276_v28 = vld [vmem:[%s2646_s26 + $0x28] sm:$0xff] }
 0x51b   :  { %823 = vmatpush.bf16.msrb.mxu2 %v2276_v28 }
 0x51c   :  { %v498_v34 = vmul.f32 %v497_v33, %v497_v33 }
 0x51e   :  { %v499_v35 = vsel %vm176_vm1, %v498_v34, 0.0  ;;  %v2275_v34 = vld [vmem:[%s2646_s26 + $0x20] sm:$0xff] }
 0x51f   :  { %500 = vadd.xlane.f32.xlu2 %v499_v35  ;;  %v2283_v35 = vld [vmem:[%s2646_s26 + $0x60] sm:$0xff]  ;;  %824 = vmatpush.bf16.msrb.mxu2 %v2275_v34 }
 0x520   :  { %837 = vmatpush.bf16.msrb.mxu3 %v2283_v35 }
 0x523   :  { %825 = vmatpush.bf16.msrb.mxu2 %v2274_v40 }
 0x524   :  { %838 = vmatpush.bf16.msrb.mxu3 %v2282_v41 }
 0x527   :  { %826 = vmatpush.bf16.msrb.mxu2 %v2273_v42 }
 0x528   :  { %839 = vmatpush.bf16.msrb.mxu3 %v2281_v43 }
 0x52b   :  { %827 = vmatpush.bf16.msrb.mxu2 %v2272_v48 }
 0x52c   :  { %840 = vmatpush.bf16.msrb.mxu3 %v2280_v49 }
 0x52f   :  { %828 = vmatpush.bf16.msrb.mxu2 %v2271_v56 }
 0x530   :  { %841 = vmatpush.bf16.msrb.mxu3 %v2279_v57 }
 0x592   :  { %v501_v60 = vpop.xlane.xlu2 %500 }
 0x593   :  { %v502_v61 = vmul.f32 %v501_v60, %v2508_v14 }
 0x595   :  { %v503_v62 = vadd.f32 1e-05, %v502_v61 }
 0x597   :  { %2416 = vrsqrt.f32 %v503_v62  ;;  %vm510_vm5 = vweird.f32 %v503_v62 }
 0x59d   :  { %v2417_v63 = vpop.eup %2416 }
 0x59e   :  { %v505_v0 = vmul.f32 %v2417_v63, %v503_v62  ;;  %vm511_vm4 = vweird.f32 %v2417_v63 }
 0x59f   :  { %vm512_vm6 = vmor %vm510_vm5, %vm511_vm4 }
 0x5a0   :  { %v506_v1 = vmul.f32 %v2417_v63, %v505_v0 }
 0x5a2   :  { %v507_v2 = vmul.f32 0.5, %v506_v1 }
 0x5a4   :  { %v508_v3 = vsub.f32 1.5, %v507_v2 }
 0x5a6   :  { %v509_v5 = vmul.f32 %v2417_v63, %v508_v3 }
 0x5a8   :  { %v513_v7 = vsel %vm512_vm6, %v2417_v63, %v509_v5 }
 0x5a9   :  { %v514_v8 = vmul.f32 %v513_v7, %v497_v33 }
 0x5ab   :  { %v518_v10 = vmul.f32 %v2383_v6, %v514_v8 }
 0x5ad   :  { %v2627_v11 = vadd.f32 %v2384_v9, %v518_v10 }
 0x5af   :  { %v531_v12 = vpack.c.bf16 %v2627_v11, %v2627_v11 }
 0x5b1   :  { %1911 = vmatmul.msk.bf16.vlgmr.msrb.gmra.mxu0 %vm176_vm1, %v531_v12  ;;  %1912 = vmatmul.msk.bf16.vlgmr.msrb.gmra.mxu1 %vm176_vm1, %v531_v12 }
 0x62e   :  { %v590_v22 = vpop.f32.mrf.mxu0  ;;  %v603_v23 = vpop.f32.mrf.mxu1 }
 0x62f   :  { %v2653_v24 = vadd.f32 %v590_v22, %v534_v18  ;;  %v2655_v25 = vadd.f32 %v603_v23, %v535_v19 }
 0x631   :  { %v2658_v26 = vmul.f32 0.70710677, %v2653_v24  ;;  %v2661_v27 = vmul.f32 0.70710677, %v2655_v25  ;;  %v608_v48 = vmul.f32 0.5, %v2655_v25 }
 0x633   :  { %v615_v30 = vand.u32 2147483647, %v2658_v26  ;;  %v616_v31 = vand.u32 2147483647, %v2661_v27  ;;  %vm611_vm15 = vcmp.ge.f32.partialorder %v2658_v26, 0.0  ;;  %vm612_vm0 = vcmp.ge.f32.partialorder %v2661_v27, 0.0 }
 0x634   :  { %v613_v41 = vsel %vm611_vm15, 1.0, %v2463_v4 }
 0x635   :  { %v617_v32 = vmul.f32 0.3275911, %v615_v30  ;;  %v618_v33 = vmul.f32 0.3275911, %v616_v31  ;;  %v669_v2 = vmul.f32 %v615_v30, %v615_v30  ;;  %v670_v7 = vmul.f32 %v616_v31, %v616_v31 }
 0x636   :  { %v592_v36 = vpop.f32.mrf.mxu0  ;;  %v605_v37 = vpop.f32.mrf.mxu1 }
 0x637   :  { %v619_v38 = vadd.f32 1.0, %v617_v32  ;;  %v620_v39 = vadd.f32 1.0, %v618_v33  ;;  %v671_v10 = vsub.f32 0.0, %v669_v2  ;;  %v672_v15 = vsub.f32 0.0, %v670_v7  ;;  %v2287_v2 = vld [vmem:[%s2557_s19 + $0x20] sm:$0xff]  ;;  %v2293_v7 = vld [vmem:[%s2568_s23 + $0x30] sm:$0xff] }
 0x639   :  { %2418 = vrcp.f32 %v619_v38  ;;  %v632_v51 = vand.u32 2147483648, %v619_v38  ;;  %v630_v54 = vand.u32 2147483647, %v619_v38  ;;  %v647_v55 = vand.u32 2147483648, %v620_v39 }
 0x63a   :  { %2420 = vrcp.f32 %v620_v39  ;;  %v645_v59 = vand.u32 2147483647, %v620_v39  ;;  %vm626_vm9 = vweird.f32 %v619_v38  ;;  %vm641_vm11 = vweird.f32 %v620_v39 }
 0x63b   :  { %v633_v61 = vor.u32 1.1754944e-38, %v632_v51  ;;  %vm631_vm12 = vcmp.eq.f32.partialorder %v630_v54, 8.507059e+37  ;;  %v648_v0 = vor.u32 1.1754944e-38, %v647_v55  ;;  %v673_v19 = vmul.f32 1.442695, %v671_v10 }
 0x63c   :  { %vm646_vm14 = vcmp.eq.f32.partialorder %v645_v59, 8.507059e+37  ;;  %v675_v22 = vmul.f32 1.442695, %v672_v15 }
 0x63d   :  { %2422 = vpow2.f32 %v673_v19  ;;  %v2386_v19 = vld [vmem:[%s2687_s2] ss:$0 sm:$0xff] }
 0x63e   :  { %2424 = vpow2.f32 %v675_v22 }
 0x63f   :  { %v2419_v44 = vpop.eup %2418 }
 0x640   :  { %v2421_v45 = vpop.eup %2420  ;;  %v622_v46 = vmul.f32 %v2419_v44, %v619_v38  ;;  %vm627_vm7 = vweird.f32 %v2419_v44 }
 0x641   :  { %v637_v47 = vmul.f32 %v2421_v45, %v620_v39  ;;  %vm642_vm8 = vweird.f32 %v2421_v45  ;;  %vm628_vm10 = vmor %vm626_vm9, %vm627_vm7 }
 0x642   :  { %v623_v50 = vsub.f32 1.0, %v622_v46  ;;  %vm643_vm13 = vmor %vm641_vm11, %vm642_vm8  ;;  %v607_v46 = vmul.f32 0.5, %v2653_v24 }
 0x643   :  { %v638_v52 = vsub.f32 1.0, %v637_v47  ;;  %v2423_v35 = vpop.eup %2422 }
 0x644   :  { %v624_v53 = vmul.f32 %v2419_v44, %v623_v50  ;;  %v2425_v37 = vpop.eup %2424 }
 0x645   :  { %v639_v58 = vmul.f32 %v2421_v45, %v638_v52  ;;  %v2385_v52 = vld [vmem:[%s2636_s16] ss:$0 sm:$0xff] }
 0x646   :  { %v625_v60 = vadd.f32 %v2419_v44, %v624_v53 }
 0x647   :  { %v640_v62 = vadd.f32 %v2421_v45, %v639_v58 }
 0x648   :  { %v629_v63 = vsel %vm628_vm10, %v2419_v44, %v625_v60  ;;  %v614_v44 = vsel %vm612_vm0, 1.0, %v2463_v4 }
 0x649   :  { %v634_v1 = vsel %vm631_vm12, %v633_v61, %v629_v63  ;;  %v644_v3 = vsel %vm643_vm13, %v2421_v45, %v640_v62  ;;  %v2290_v63 = vld [vmem:[%s2557_s19 + $0x38] sm:$0xff] }
 0x64a   :  { %v651_v5 = vmul.f32 1.0614054, %v634_v1  ;;  %v649_v6 = vsel %vm646_vm14, %v648_v0, %v644_v3  ;;  %926 = vmatpush.bf16.msra.mxu0 %v2290_v63  ;;  %v2289_v0 = vld [vmem:[%s2557_s19 + $0x30] sm:$0xff]  ;;  %v2294_v3 = vld [vmem:[%s2568_s23 + $0x38] sm:$0xff] }
 0x64b   :  { %v652_v8 = vmul.f32 1.0614054, %v649_v6  ;;  %981 = vmatpush.bf16.msra.mxu1 %v2294_v3 }
 0x64c   :  { %v653_v9 = vadd.f32 -1.4531521, %v651_v5 }
 0x64d   :  { %v654_v12 = vadd.f32 -1.4531521, %v652_v8 }
 0x64e   :  { %v655_v13 = vmul.f32 %v653_v9, %v634_v1  ;;  %927 = vmatpush.bf16.msra.mxu0 %v2289_v0  ;;  %v2292_v9 = vld [vmem:[%s2568_s23 + $0x28] sm:$0xff] }
 0x64f   :  { %v656_v16 = vmul.f32 %v654_v12, %v649_v6  ;;  %982 = vmatpush.bf16.msra.mxu1 %v2293_v7  ;;  %v2044_v0 = vld [vmem:[%s2606_s11 + $0x48] sm:$0xf0] }
 0x650   :  { %v657_v18 = vadd.f32 1.4214138, %v655_v13 }
 0x651   :  { %v658_v20 = vadd.f32 1.4214138, %v656_v16 }
 0x652   :  { %v659_v21 = vmul.f32 %v657_v18, %v634_v1 }
 0x653   :  { %v660_v23 = vmul.f32 %v658_v20, %v649_v6  ;;  %983 = vmatpush.bf16.msra.mxu1 %v2292_v9 }
 0x654   :  { %v661_v28 = vadd.f32 -0.28449672, %v659_v21  ;;  %v2387_v21 = vld [vmem:[%s2693_s9] ss:$0 sm:$0xff] }
 0x655   :  { %v662_v29 = vadd.f32 -0.28449672, %v660_v23 }
 0x656   :  { %v663_v30 = vmul.f32 %v661_v28, %v634_v1 }
 0x657   :  { %v664_v32 = vmul.f32 %v662_v29, %v649_v6 }
 0x658   :  { %v665_v31 = vadd.f32 0.2548296, %v663_v30  ;;  %v2291_v30 = vld [vmem:[%s2568_s23 + $0x20] sm:$0xff] }
 0x659   :  { %v666_v33 = vadd.f32 0.2548296, %v664_v32  ;;  %984 = vmatpush.bf16.msra.mxu1 %v2291_v30  ;;  %v2388_v32 = vld [vmem:[%s2551_s15 + $0x1] ss:$0 sm:$0xff]  ;;  %s2479_s15 = smov 23  }
 0x65a   :  { %v667_v34 = vmul.f32 %v665_v31, %v634_v1  ;;  %v2288_v1 = vld [vmem:[%s2557_s19 + $0x28] sm:$0xff] }
 0x65b   :  { %v668_v36 = vmul.f32 %v666_v33, %v649_v6  ;;  %928 = vmatpush.bf16.msra.mxu0 %v2288_v1 }
 0x65c   :  { %v677_v38 = vmul.f32 %v2423_v35, %v667_v34 }
 0x65d   :  { %v678_v39 = vmul.f32 %v2425_v37, %v668_v36  ;;  %v2389_v36 = vld [vmem:[%s2583_s27 + $0x1] ss:$0 sm:$0xff]  ;;  %s2784_s27 = sld [smem:[%s2865_s0 + %s2479_s15]]   ;;  %s2486_s15 = smov 28  }
 0x65e   :  { %v679_v40 = vsub.f32 1.0, %v677_v38 }
 0x65f   :  { %v680_v42 = vsub.f32 1.0, %v678_v39  ;;  %929 = vmatpush.bf16.msra.mxu0 %v2287_v2 }
 0x660   :  { %v681_v43 = vmul.f32 %v679_v40, %v613_v41 }
 0x661   :  { %v682_v45 = vmul.f32 %v680_v42, %v614_v44 }
 0x662   :  { %v683_v47 = vadd.f32 1.0, %v681_v43 }
 0x663   :  { %v684_v49 = vadd.f32 1.0, %v682_v45 }
 0x664   :  { %v685_v26 = vmul.f32 %v683_v47, %v607_v46  ;;  %v2066_v47 = vld [vmem:[%s2606_s11 + $0x70] sm:$0xf] }
 0x665   :  { %v686_v50 = vmul.f32 %v684_v49, %v608_v48  ;;  %v2302_v48 = vld [vmem:[%s2606_s11 + $0x74] sm:$0xf0]  ;;  %v2301_v49 = vld [vmem:[%s2606_s11 + $0x74] sm:$0xf] }
 0x666   :  { %v719_v51 = vpack.c.bf16 %v685_v26, %v685_v26  ;;  %v2067_v26 = vor.u32 %v2302_v48, %v2066_v47 }
 0x667   :  { %v720_v27 = vpack.c.bf16 %v686_v50, %v686_v50  ;;  %v2068_v50 = vld [vmem:[%s2606_s11 + $0x78] sm:$0xf0] }
 0x668   :  { %829 = vmatmul.bf16.vlgmr.msrb.gmra.mxu2 %v719_v51  ;;  %v2071_v51 = vor.u32 %v2301_v49, %v2068_v50  ;;  %1089 = vmatpush.bf16.msrb.mxu0 %v2067_v26  ;;  %v2306_v50 = vld [vmem:[%s2646_s26 + $0x98] sm:$0xff] }
 0x669   :  { %842 = vmatmul.bf16.vlgmr.msrb.gmra.mxu3 %v720_v27  ;;  %v2058_v27 = vld [vmem:[%s2606_s11 + $0x60] sm:$0xf] }
 0x66a   :  { %1102 = vmatpush.bf16.msrb.mxu1 %v2071_v51  ;;  %v2314_v51 = vld [vmem:[%s2646_s26 + $0xd8] sm:$0xff] }
 0x6eb   :  { %v830_v53 = vpop.f32.mrf.mxu2 }
 0x6ec   :  { %v831_v54 = vadd.f32 %v2385_v52, %v830_v53  ;;  %v843_v55 = vpop.f32.mrf.mxu3  ;;  %v2300_v52 = vld [vmem:[%s2606_s11 + $0x64] sm:$0xf0]  ;;  %v2299_v53 = vld [vmem:[%s2606_s11 + $0x64] sm:$0xf] }
 0x6ee   :  { %v844_v56 = vadd.f32 %v843_v55, %v831_v54  ;;  %v2059_v54 = vor.u32 %v2300_v52, %v2058_v27  ;;  %v2060_v55 = vld [vmem:[%s2606_s11 + $0x68] sm:$0xf0]  ;;  %v2305_v27 = vld [vmem:[%s2646_s26 + $0x90] sm:$0xff] }
 0x6ef   :  { %v2313_v52 = vld [vmem:[%s2646_s26 + $0xd0] sm:$0xff] }
 0x6f0   :  { %v847_v24 = vadd.f32 %v844_v56, %v2627_v11  ;;  %v2063_v56 = vor.u32 %v2299_v53, %v2060_v55  ;;  %1090 = vmatpush.bf16.msrb.mxu0 %v2059_v54 }
 0x6f2   :  { %v850_v25 = vsel %vm176_vm1, %v847_v24, 0.0  ;;  %1103 = vmatpush.bf16.msrb.mxu1 %v2063_v56 }
 0x6f3   :  { %v832_v57 = vpop.f32.mrf.mxu2  ;;  %851 = vadd.xlane.f32.xlu0 %v850_v25  ;;  %v2298_v25 = vld [vmem:[%s2606_s11 + $0x54] sm:$0xf0] }
 0x6f4   :  { %v845_v58 = vpop.f32.mrf.mxu3  ;;  %v2297_v57 = vld [vmem:[%s2606_s11 + $0x54] sm:$0xf] }
 0x766   :  { %v852_v59 = vpop.xlane.xlu0 %851 }
 0x767   :  { %v853_v60 = vmul.f32 %v852_v59, %v2508_v14  ;;  %v2052_v59 = vld [vmem:[%s2606_s11 + $0x58] sm:$0xf0] }
 0x769   :  { %v854_v61 = vsub.f32 %v847_v24, %v853_v60  ;;  %v2050_v24 = vld [vmem:[%s2606_s11 + $0x50] sm:$0xf]  ;;  %v2055_v60 = vor.u32 %v2297_v57, %v2052_v59 }
 0x76a   :  { %v2051_v58 = vor.u32 %v2298_v25, %v2050_v24  ;;  %v2304_v24 = vld [vmem:[%s2646_s26 + $0x88] sm:$0xff] }
 0x76b   :  { %v855_v11 = vmul.f32 %v854_v61, %v854_v61  ;;  %1104 = vmatpush.bf16.msrb.mxu1 %v2055_v60  ;;  %v2312_v25 = vld [vmem:[%s2646_s26 + $0xc8] sm:$0xff] }
 0x76c   :  { %1091 = vmatpush.bf16.msrb.mxu0 %v2051_v58 }
 0x76d   :  { %v856_v62 = vsel %vm176_vm1, %v855_v11, 0.0  ;;  %v2296_v11 = vld [vmem:[%s2606_s11 + $0x44] sm:$0xf0] }
 0x76e   :  { %857 = vadd.xlane.f32.xlu1 %v856_v62  ;;  %v2295_v62 = vld [vmem:[%s2606_s11 + $0x44] sm:$0xf] }
 0x76f   :  { %v2047_v1 = vor.u32 %v2295_v62, %v2044_v0  ;;  %v2303_v0 = vld [vmem:[%s2646_s26 + $0x80] sm:$0xff] }
 0x771   :  { %1105 = vmatpush.bf16.msrb.mxu1 %v2047_v1  ;;  %v2311_v1 = vld [vmem:[%s2646_s26 + $0xc0] sm:$0xff] }
 0x7e1   :  { %v858_v5 = vpop.xlane.xlu1 %857 }
 0x7e2   :  { %v859_v6 = vmul.f32 %v858_v5, %v2508_v14 }
 0x7e4   :  { %v860_v8 = vadd.f32 1e-05, %v859_v6 }
 0x7e6   :  { %2426 = vrsqrt.f32 %v860_v8  ;;  %vm867_vm3 = vweird.f32 %v860_v8 }
 0x7ec   :  { %v2427_v10 = vpop.eup %2426 }
 0x7ed   :  { %v862_v12 = vmul.f32 %v2427_v10, %v860_v8  ;;  %vm868_vm2 = vweird.f32 %v2427_v10 }
 0x7ee   :  { %vm869_vm4 = vmor %vm867_vm3, %vm868_vm2 }
 0x7ef   :  { %v863_v13 = vmul.f32 %v2427_v10, %v862_v12 }
 0x7f1   :  { %v864_v15 = vmul.f32 0.5, %v863_v13  ;;  %v2390_v13 = vld [vmem:[%s2596_s1 + $0x1] ss:$0 sm:$0xff]  ;;  %s2480_s1 = smov 22  }
 0x7f3   :  { %v865_v16 = vsub.f32 1.5, %v864_v15 }
 0x7f5   :  { %v866_v18 = vmul.f32 %v2427_v10, %v865_v16  ;;  %v2391_v16 = vld [vmem:[%s2601_s6 + $0x1] ss:$0 sm:$0xff] }
 0x7f7   :  { %v870_v20 = vsel %vm869_vm4, %v2427_v10, %v866_v18 }
 0x7f8   :  { %v871_v22 = vmul.f32 %v870_v20, %v854_v61  ;;  %v2042_v61 = vld [vmem:[%s2606_s11 + $0x40] sm:$0xf]  ;;  %s1810_s11 = sld [smem:[%s2865_s0 + %s2480_s1]]  }
 0x7f9   :  { %v2043_v63 = vor.u32 %v2296_v11, %v2042_v61 }
 0x7fa   :  { %v875_v23 = vmul.f32 %v2386_v19, %v871_v22  ;;  %v2039_v22 = vld [vmem:[%s2641_s21 + $0x2] sm:$0x3]  ;;  %s1813_s21 = sld [smem:[%s2865_s0 + %s2482_s17]]  }
 0x7fb   :  { %1092 = vmatpush.bf16.msrb.mxu0 %v2043_v63  ;;  %v1039_v30 = vperm.slane %v2039_v22, 1 }
 0x7fc   :  { %v879_v28 = vadd.f32 %v2387_v21, %v875_v23  ;;  %v2310_v23 = vld [vmem:[%s2646_s26 + $0xb8] sm:$0xff] }
 0x7fd   :  { %1327 = vmatpush.bf16.msra.mxu2 %v2310_v23 }
 0x7fe   :  { %v889_v29 = vpack.c.bf16 %v879_v28, %v879_v28 }
 0x800   :  { %2002 = vmatmul.msk.bf16.vlgmr.msra.gmra.mxu0 %vm176_vm1, %v889_v29  ;;  %v1038_v29 = vperm.slane %v2039_v22, 0 }
 0x87d   :  { %v931_v31 = vpop.f32.mrf.mxu0 }
 0x87e   :  { %v932_v33 = vadd.f32 %v2388_v32, %v931_v31  ;;  %v2309_v32 = vld [vmem:[%s2646_s26 + $0xb0] sm:$0xff] }
 0x87f   :  { %v2317_v31 = vld [vmem:[%s2646_s26 + $0xf0] sm:$0xff]  ;;  %1328 = vmatpush.bf16.msra.mxu2 %v2309_v32 }
 0x880   :  { %v944_v34 = vpack.c.bf16 %v932_v33, %v932_v33 }
 0x882   :  { %2028 = vmatmul.msk.bf16.vlgmr.msra.gmra.mxu1 %vm176_vm1, %v944_v34 }
 0x885   :  { %v933_v35 = vpop.f32.mrf.mxu0 }
 0x8ff   :  { %v986_v37 = vpop.f32.mrf.mxu1 }
 0x900   :  { %v987_v38 = vadd.f32 %v2389_v36, %v986_v37 }
 0x902   :  { %v990_v39 = vadd.f32 %v987_v38, %v879_v28  ;;  %v2318_v28 = vld [vmem:[%s2646_s26 + $0xf8] sm:$0xff] }
 0x903   :  { %1340 = vmatpush.bf16.msra.mxu3 %v2318_v28 }
 0x904   :  { %v995_v40 = vsel %vm176_vm1, %v990_v39, 0.0 }
 0x905   :  { %996 = vadd.xlane.f32.xlu2 %v995_v40  ;;  %v2316_v40 = vld [vmem:[%s2646_s26 + $0xe8] sm:$0xff] }
 0x907   :  { %v988_v41 = vpop.f32.mrf.mxu1  ;;  %1341 = vmatpush.bf16.msra.mxu3 %v2317_v31 }
 0x90b   :  { %1342 = vmatpush.bf16.msra.mxu3 %v2316_v40 }
 0x978   :  { %v997_v42 = vpop.xlane.xlu2 %996 }
 0x979   :  { %v998_v43 = vmul.f32 %v997_v42, %v2508_v14 }
 0x97b   :  { %v999_v44 = vsub.f32 %v990_v39, %v998_v43  ;;  %v2308_v39 = vld [vmem:[%s2646_s26 + $0xa8] sm:$0xff] }
 0x97c   :  { %1329 = vmatpush.bf16.msra.mxu2 %v2308_v39 }
 0x97d   :  { %v1000_v45 = vmul.f32 %v999_v44, %v999_v44 }
 0x97f   :  { %v1001_v46 = vsel %vm176_vm1, %v1000_v45, 0.0  ;;  %v2307_v45 = vld [vmem:[%s2646_s26 + $0xa0] sm:$0xff] }
 0x980   :  { %1002 = vadd.xlane.f32.xlu0 %v1001_v46  ;;  %v2315_v46 = vld [vmem:[%s2646_s26 + $0xe0] sm:$0xff]  ;;  %1330 = vmatpush.bf16.msra.mxu2 %v2307_v45  ;;  %s1814_s26 = sld [smem:[%s2865_s0 + %s2483_s22]]  }
 0x981   :  { %1343 = vmatpush.bf16.msra.mxu3 %v2315_v46 }
 0x984   :  { %1331 = vmatpush.bf16.msra.mxu2 %v2306_v50 }
 0x985   :  { %1344 = vmatpush.bf16.msra.mxu3 %v2314_v51 }
 0x988   :  { %1332 = vmatpush.bf16.msra.mxu2 %v2305_v27 }
 0x989   :  { %1345 = vmatpush.bf16.msra.mxu3 %v2313_v52 }
 0x98c   :  { %1333 = vmatpush.bf16.msra.mxu2 %v2304_v24 }
 0x98d   :  { %1346 = vmatpush.bf16.msra.mxu3 %v2312_v25 }
 0x990   :  { %1334 = vmatpush.bf16.msra.mxu2 %v2303_v0 }
 0x991   :  { %1347 = vmatpush.bf16.msra.mxu3 %v2311_v1 }
 0x9f3   :  { %v1003_v2 = vpop.xlane.xlu0 %1002 }
 0x9f4   :  { %v1004_v3 = vmul.f32 %v1003_v2, %v2508_v14 }
 0x9f6   :  { %v1005_v5 = vadd.f32 1e-05, %v1004_v3 }
 0x9f8   :  { %2428 = vrsqrt.f32 %v1005_v5  ;;  %vm1012_vm6 = vweird.f32 %v1005_v5 }
 0x9fe   :  { %v2429_v6 = vpop.eup %2428 }
 0x9ff   :  { %v1007_v7 = vmul.f32 %v2429_v6, %v1005_v5  ;;  %vm1013_vm5 = vweird.f32 %v2429_v6 }
 0xa00   :  { %vm1014_vm7 = vmor %vm1012_vm6, %vm1013_vm5 }
 0xa01   :  { %v1008_v8 = vmul.f32 %v2429_v6, %v1007_v7 }
 0xa03   :  { %v1009_v9 = vmul.f32 0.5, %v1008_v8 }
 0xa05   :  { %v1010_v10 = vsub.f32 1.5, %v1009_v9 }
 0xa07   :  { %v1011_v12 = vmul.f32 %v2429_v6, %v1010_v10 }
 0xa09   :  { %v1015_v15 = vsel %vm1014_vm7, %v2429_v6, %v1011_v12 }
 0xa0a   :  { %v1016_v18 = vmul.f32 %v1015_v15, %v999_v44 }
 0xa0c   :  { %v1020_v19 = vmul.f32 %v2390_v13, %v1016_v18 }
 0xa0e   :  { %v2735_v20 = vadd.f32 %v2391_v16, %v1020_v19 }
 0xa10   :  { %v1034_v21 = vpack.c.bf16 %v2735_v20, %v2735_v20 }
 0xa12   :  { %2072 = vmatmul.msk.bf16.vlgmr.msrb.gmra.mxu0 %vm176_vm1, %v1034_v21  ;;  %2073 = vmatmul.msk.bf16.vlgmr.msrb.gmra.mxu1 %vm176_vm1, %v1034_v21 }
 0xa8f   :  { %v1094_v33 = vpop.f32.mrf.mxu0  ;;  %v1107_v34 = vpop.f32.mrf.mxu1 }
 0xa90   :  { %v2746_v35 = vadd.f32 %v1094_v33, %v1038_v29  ;;  %v2748_v36 = vadd.f32 %v1107_v34, %v1039_v30 }
 0xa92   :  { %v2751_v37 = vmul.f32 0.70710677, %v2746_v35  ;;  %v2754_v38 = vmul.f32 0.70710677, %v2748_v36  ;;  %v1112_v24 = vmul.f32 0.5, %v2748_v36 }
 0xa94   :  { %v1119_v41 = vand.u32 2147483647, %v2751_v37  ;;  %v1120_v42 = vand.u32 2147483647, %v2754_v38  ;;  %vm1115_vm0 = vcmp.ge.f32.partialorder %v2751_v37, 0.0  ;;  %vm1116_vm2 = vcmp.ge.f32.partialorder %v2754_v38, 0.0 }
 0xa95   :  { %v1117_v51 = vsel %vm1115_vm0, 1.0, %v2463_v4 }
 0xa96   :  { %v1121_v43 = vmul.f32 0.3275911, %v1119_v41  ;;  %v1122_v44 = vmul.f32 0.3275911, %v1120_v42  ;;  %v1173_v9 = vmul.f32 %v1119_v41, %v1119_v41  ;;  %v1174_v15 = vmul.f32 %v1120_v42, %v1120_v42 }
 0xa97   :  { %v1096_v47 = vpop.f32.mrf.mxu0  ;;  %v1109_v48 = vpop.f32.mrf.mxu1 }
 0xa98   :  { %v1123_v49 = vadd.f32 1.0, %v1121_v43  ;;  %v1124_v26 = vadd.f32 1.0, %v1122_v44  ;;  %v1175_v19 = vsub.f32 0.0, %v1173_v9  ;;  %v1176_v23 = vsub.f32 0.0, %v1174_v15  ;;  %v2319_v9 = vld [vmem:[%s1810_s11] sm:$0xff] }
 0xa9a   :  { %2430 = vrcp.f32 %v1123_v49  ;;  %v1136_v58 = vand.u32 2147483648, %v1123_v49  ;;  %v1134_v61 = vand.u32 2147483647, %v1123_v49  ;;  %v1151_v11 = vand.u32 2147483648, %v1124_v26 }
 0xa9b   :  { %2432 = vrcp.f32 %v1124_v26  ;;  %v1149_v63 = vand.u32 2147483647, %v1124_v26  ;;  %vm1130_vm10 = vweird.f32 %v1123_v49  ;;  %vm1145_vm12 = vweird.f32 %v1124_v26 }
 0xa9c   :  { %v1137_v3 = vor.u32 1.1754944e-38, %v1136_v58  ;;  %vm1135_vm13 = vcmp.eq.f32.partialorder %v1134_v61, 8.507059e+37  ;;  %v1152_v7 = vor.u32 1.1754944e-38, %v1151_v11  ;;  %v1177_v30 = vmul.f32 1.442695, %v1175_v19 }
 0xa9d   :  { %vm1150_vm15 = vcmp.eq.f32.partialorder %v1149_v63, 8.507059e+37  ;;  %v1179_v33 = vmul.f32 1.442695, %v1176_v23 }
 0xa9e   :  { %2434 = vpow2.f32 %v1177_v30  ;;  %v2393_v30 = vld [vmem:[%s2687_s2 + $0x1] ss:$0 sm:$0xff]  ;;  %s1815_s2 = sld [smem:[%s2865_s0 + %s2484_s28]]  }
 0xa9f   :  { %2436 = vpow2.f32 %v1179_v33 }
 0xaa0   :  { %v2431_v53 = vpop.eup %2430 }
 0xaa1   :  { %v2433_v54 = vpop.eup %2432  ;;  %v1126_v55 = vmul.f32 %v2431_v53, %v1123_v49  ;;  %vm1131_vm8 = vweird.f32 %v2431_v53 }
 0xaa2   :  { %v1141_v56 = vmul.f32 %v2433_v54, %v1124_v26  ;;  %vm1146_vm9 = vweird.f32 %v2433_v54  ;;  %vm1132_vm11 = vmor %vm1130_vm10, %vm1131_vm8 }
 0xaa3   :  { %v1127_v57 = vsub.f32 1.0, %v1126_v55  ;;  %vm1147_vm14 = vmor %vm1145_vm12, %vm1146_vm9  ;;  %v1111_v55 = vmul.f32 0.5, %v2746_v35 }
 0xaa4   :  { %v1142_v59 = vsub.f32 1.0, %v1141_v56  ;;  %v2435_v46 = vpop.eup %2434 }
 0xaa5   :  { %v1128_v60 = vmul.f32 %v2431_v53, %v1127_v57  ;;  %v2437_v48 = vpop.eup %2436 }
 0xaa6   :  { %v1143_v62 = vmul.f32 %v2433_v54, %v1142_v59  ;;  %v2392_v59 = vld [vmem:[%s2636_s16 + $0x1] ss:$0 sm:$0xff]  ;;  %s2792_s16 = sld [smem:[%s2865_s0 + %s2481_s12]]  }
 0xaa7   :  { %v1129_v2 = vadd.f32 %v2431_v53, %v1128_v60 }
 0xaa8   :  { %v1144_v5 = vadd.f32 %v2433_v54, %v1143_v62 }
 0xaa9   :  { %v1133_v6 = vsel %vm1132_vm11, %v2431_v53, %v1129_v2  ;;  %v1118_v53 = vsel %vm1116_vm2, 1.0, %v2463_v4 }
 0xaaa   :  { %v1138_v8 = vsel %vm1135_vm13, %v1137_v3, %v1133_v6  ;;  %v1148_v10 = vsel %vm1147_vm14, %v2433_v54, %v1144_v5  ;;  %vm1669_vm14 = vcmask 261120  }
 0xaab   :  { %v1155_v12 = vmul.f32 1.0614054, %v1138_v8  ;;  %v1153_v13 = vsel %vm1150_vm15, %v1152_v7, %v1148_v10  ;;  %v2321_v7 = vld [vmem:[%s1810_s11 + $0x10] sm:$0xff] }
 0xaac   :  { %v1156_v16 = vmul.f32 1.0614054, %v1153_v13 }
 0xaad   :  { %v1157_v18 = vadd.f32 -1.4531521, %v1155_v12 }
 0xaae   :  { %v1158_v21 = vadd.f32 -1.4531521, %v1156_v16  ;;  %v2325_v16 = vld [vmem:[%s2792_s16 + $0x10] sm:$0xff] }
 0xaaf   :  { %v1159_v22 = vmul.f32 %v1157_v18, %v1138_v8  ;;  %v2324_v18 = vld [vmem:[%s2792_s16 + $0x8] sm:$0xff] }
 0xab0   :  { %v1160_v28 = vmul.f32 %v1158_v21, %v1153_v13 }
 0xab1   :  { %v1161_v29 = vadd.f32 1.4214138, %v1159_v22 }
 0xab2   :  { %v1162_v32 = vadd.f32 1.4214138, %v1160_v28 }
 0xab3   :  { %v1163_v31 = vmul.f32 %v1161_v29, %v1138_v8 }
 0xab4   :  { %v1164_v34 = vmul.f32 %v1162_v32, %v1153_v13 }
 0xab5   :  { %v1165_v39 = vadd.f32 -0.28449672, %v1163_v31  ;;  %v2394_v31 = vld [vmem:[%s2693_s9 + $0x1] ss:$0 sm:$0xff]  ;;  %s2825_s9 = sld [smem:[%s2865_s0 + %s2485_s4]]  }
 0xab6   :  { %v1166_v40 = vadd.f32 -0.28449672, %v1164_v34 }
 0xab7   :  { %v1167_v41 = vmul.f32 %v1165_v39, %v1138_v8 }
 0xab8   :  { %v1168_v43 = vmul.f32 %v1166_v40, %v1153_v13 }
 0xab9   :  { %v1169_v42 = vadd.f32 0.2548296, %v1167_v41 }
 0xaba   :  { %v1170_v44 = vadd.f32 0.2548296, %v1168_v43  ;;  %v2323_v43 = vld [vmem:[%s2792_s16] sm:$0xff] }
 0xabb   :  { %v1171_v45 = vmul.f32 %v1169_v42, %v1138_v8  ;;  %v2320_v8 = vld [vmem:[%s1810_s11 + $0x8] sm:$0xff]  ;;  %v2330_v42 = vld [vmem:[%s1814_s26 + $0x18] sm:$0xff] }
 0xabc   :  { %v1172_v47 = vmul.f32 %v1170_v44, %v1153_v13  ;;  %v2326_v13 = vld [vmem:[%s2792_s16 + $0x18] sm:$0xff]  ;;  %v2329_v44 = vld [vmem:[%s1814_s26 + $0x10] sm:$0xff] }
 0xabd   :  { %v1181_v49 = vmul.f32 %v2435_v46, %v1171_v45  ;;  %1486 = vmatpush.bf16.msra.mxu1 %v2326_v13  ;;  %v2395_v45 = vld [vmem:[%s2784_s27] ss:$0 sm:$0xff]  ;;  %s1816_s27 = sld [smem:[%s2865_s0 + %s2486_s15]]  }
 0xabe   :  { %v1182_v26 = vmul.f32 %v2437_v48, %v1172_v47 }
 0xabf   :  { %v1183_v50 = vsub.f32 1.0, %v1181_v49 }
 0xac0   :  { %v1184_v27 = vsub.f32 1.0, %v1182_v26  ;;  %v2327_v26 = vld [vmem:[%s1814_s26] sm:$0xff] }
 0xac1   :  { %v1185_v52 = vmul.f32 %v1183_v50, %v1117_v51  ;;  %1487 = vmatpush.bf16.msra.mxu1 %v2325_v16  ;;  %v2396_v50 = vld [vmem:[%s1813_s21] ss:$0 sm:$0xff] }
 0xac2   :  { %v1186_v54 = vmul.f32 %v1184_v27, %v1118_v53 }
 0xac3   :  { %v1187_v56 = vadd.f32 1.0, %v1185_v52 }
 0xac4   :  { %v1188_v25 = vadd.f32 1.0, %v1186_v54 }
 0xac5   :  { %v1189_v37 = vmul.f32 %v1187_v56, %v1111_v55  ;;  %1488 = vmatpush.bf16.msra.mxu1 %v2324_v18  ;;  %v2397_v55 = vld [vmem:[%s1815_s2] ss:$0 sm:$0xff] }
 0xac6   :  { %v1190_v57 = vmul.f32 %v1188_v25, %v1112_v24 }
 0xac7   :  { %v1224_v58 = vpack.c.bf16 %v1189_v37, %v1189_v37 }
 0xac8   :  { %v1225_v38 = vpack.c.bf16 %v1190_v57, %v1190_v57 }
 0xac9   :  { %1335 = vmatmul.bf16.vlgmr.msra.gmra.mxu2 %v1224_v58  ;;  %1489 = vmatpush.bf16.msra.mxu1 %v2323_v43 }
 0xaca   :  { %1348 = vmatmul.bf16.vlgmr.msra.gmra.mxu3 %v1225_v38 }
 0xb4c   :  { %v1336_v60 = vpop.f32.mrf.mxu2 }
 0xb4d   :  { %v1337_v61 = vadd.f32 %v2392_v59, %v1336_v60  ;;  %v1349_v11 = vpop.f32.mrf.mxu3 }
 0xb4f   :  { %v1350_v62 = vadd.f32 %v1349_v11, %v1337_v61 }
 0xb51   :  { %v1353_v63 = vadd.f32 %v1350_v62, %v2735_v20  ;;  %v2322_v20 = vld [vmem:[%s1810_s11 + $0x18] sm:$0xff] }
 0xb52   :  { %1433 = vmatpush.bf16.msra.mxu0 %v2322_v20 }
 0xb53   :  { %v1358_v0 = vsel %vm176_vm1, %v1353_v63, 0.0 }
 0xb54   :  { %v1338_v35 = vpop.f32.mrf.mxu2  ;;  %1359 = vadd.xlane.f32.xlu1 %v1358_v0 }
 0xb55   :  { %v1351_v1 = vpop.f32.mrf.mxu3 }
 0xb56   :  { %1434 = vmatpush.bf16.msra.mxu0 %v2321_v7  ;;  %v2454_v7 = vld [vmem:[%s2533_s3] ss:$0 sm:$0xff]  ;;  %s2487_s3 = smov 30  }
 0xb57   :  { %s2840_s6 = sld [smem:[%s2865_s0 + %s2487_s3]]  }
 0xb5a   :  { %1435 = vmatpush.bf16.msra.mxu0 %v2320_v8 }
 0xb5e   :  { %1436 = vmatpush.bf16.msra.mxu0 %v2319_v9  ;;  %v2331_v9 = vld [vmem:[%s1816_s27] sm:$0xff] }
 0xb62   :  { %1540 = vmatpush.bf16.msrb.mxu0 %v2330_v42 }
 0xb66   :  { %1541 = vmatpush.bf16.msrb.mxu0 %v2329_v44 }
 0xbc7   :  { %v1360_v36 = vpop.xlane.xlu1 %1359 }
 0xbc8   :  { %v1361_v2 = vmul.f32 %v1360_v36, %v2508_v14  ;;  %v2334_v36 = vld [vmem:[%s1816_s27 + $0x18] sm:$0xff] }
 0xbc9   :  { %1658 = vmatpush.bf16.msrb.mxu1 %v2334_v36 }
 0xbca   :  { %v1362_v3 = vsub.f32 %v1353_v63, %v1361_v2 }
 0xbcc   :  { %v1363_v5 = vmul.f32 %v1362_v3, %v1362_v3 }
 0xbce   :  { %v1364_v6 = vsel %vm176_vm1, %v1363_v5, 0.0 }
 0xbcf   :  { %1365 = vadd.xlane.f32.xlu2 %v1364_v6  ;;  %v2332_v6 = vld [vmem:[%s1816_s27 + $0x8] sm:$0xff] }
 0xc42   :  { %v1366_v10 = vpop.xlane.xlu2 %1365 }
 0xc43   :  { %v1367_v12 = vmul.f32 %v1366_v10, %v2508_v14  ;;  %v2455_v10 = vld [vmem:[%s2538_s7] ss:$0 sm:$0xff] }
 0xc45   :  { %v1368_v15 = vadd.f32 1e-05, %v1367_v12 }
 0xc47   :  { %2438 = vrsqrt.f32 %v1368_v15  ;;  %vm1375_vm4 = vweird.f32 %v1368_v15 }
 0xc4d   :  { %v2439_v19 = vpop.eup %2438 }
 0xc4e   :  { %v1370_v21 = vmul.f32 %v2439_v19, %v1368_v15  ;;  %vm1376_vm3 = vweird.f32 %v2439_v19 }
 0xc4f   :  { %vm1377_vm5 = vmor %vm1375_vm4, %vm1376_vm3 }
 0xc50   :  { %v1371_v22 = vmul.f32 %v2439_v19, %v1370_v21 }
 0xc52   :  { %v1372_v23 = vmul.f32 0.5, %v1371_v22 }
 0xc54   :  { %v1373_v28 = vsub.f32 1.5, %v1372_v23 }
 0xc56   :  { %v1374_v29 = vmul.f32 %v2439_v19, %v1373_v28 }
 0xc58   :  { %v1378_v32 = vsel %vm1377_vm5, %v2439_v19, %v1374_v29 }
 0xc59   :  { %v1379_v33 = vmul.f32 %v1378_v32, %v1362_v3  ;;  %v2333_v3 = vld [vmem:[%s1816_s27 + $0x10] sm:$0xff] }
 0xc5a   :  { %1659 = vmatpush.bf16.msrb.mxu1 %v2333_v3 }
 0xc5b   :  { %v1383_v34 = vmul.f32 %v2393_v30, %v1379_v33 }
 0xc5d   :  { %v1387_v39 = vadd.f32 %v2394_v31, %v1383_v34 }
 0xc5e   :  { %1660 = vmatpush.bf16.msrb.mxu1 %v2332_v6 }
 0xc5f   :  { %v1388_v40 = vadd.f32 %v1387_v39, %v2575_v17  ;;  %v2328_v17 = vld [vmem:[%s1814_s26 + $0x8] sm:$0xff] }
 0xc60   :  { %1542 = vmatpush.bf16.msrb.mxu0 %v2328_v17 }
 0xc61   :  { %v1397_v41 = vpack.c.bf16 %v1388_v40, %v1388_v40 }
 0xc62   :  { %1661 = vmatpush.bf16.msrb.mxu1 %v2331_v9 }
 0xc63   :  { %2189 = vmatmul.msk.bf16.vlgmr.msra.gmra.mxu0 %vm176_vm1, %v1397_v41 }
 0xc64   :  { %1543 = vmatpush.bf16.msrb.mxu0 %v2327_v26 }
 0xce0   :  { %v1438_v46 = vpop.f32.mrf.mxu0 }
 0xce1   :  { %v1439_v47 = vadd.f32 %v2395_v45, %v1438_v46 }
 0xce3   :  { %v1450_v48 = vpack.c.bf16 %v1439_v47, %v1439_v47 }
 0xce5   :  { %2206 = vmatmul.msk.bf16.vlgmr.msra.gmra.mxu1 %vm176_vm1, %v1450_v48 }
 0xce8   :  { %v1440_v49 = vpop.f32.mrf.mxu0 }
 0xd62   :  { %v1491_v51 = vpop.f32.mrf.mxu1 }
 0xd63   :  { %v1492_v27 = vadd.f32 %v2396_v50, %v1491_v51 }
 0xd65   :  { %v2814_v52 = vadd.f32 %v1492_v27, %v1388_v40 }
 0xd67   :  { %v1504_v53 = vpack.c.bf16 %v2814_v52, %v2814_v52 }
 0xd69   :  { %2223 = vmatmul.msk.bf16.vlgmr.msrb.gmra.mxu0 %vm176_vm1, %v1504_v53 }
 0xd6a   :  { %v1493_v54 = vpop.f32.mrf.mxu1 }
 0xde6   :  { %v1545_v56 = vpop.f32.mrf.mxu0 }
 0xde7   :  { %v1546_v24 = vadd.f32 %v2397_v55, %v1545_v56 }
 0xde9   :  { %v1549_v25 = vsel %vm176_vm1, %v1546_v24, 0.0 }
 0xdea   :  { %1550 = vadd.xlane.f32.xlu0 %v1549_v25  ;;  %v2398_v25 = vld [vmem:[%s2825_s9] ss:$0 sm:$0xff] }
 0xdee   :  { %v1547_v37 = vpop.f32.mrf.mxu0 }
 0xe5d   :  { %v1551_v57 = vpop.xlane.xlu0 %1550 }
 0xe5e   :  { %v1552_v58 = vmul.f32 %v1551_v57, %v2508_v14 }
 0xe60   :  { %v1553_v38 = vsub.f32 %v1546_v24, %v1552_v58 }
 0xe62   :  { %v1554_v59 = vmul.f32 %v1553_v38, %v1553_v38 }
 0xe64   :  { %v1555_v60 = vsel %vm176_vm1, %v1554_v59, 0.0 }
 0xe65   :  { %1556 = vadd.xlane.f32.xlu1 %v1555_v60 }
 0xed8   :  { %v1557_v61 = vpop.xlane.xlu1 %1556 }
 0xed9   :  { %v1558_v11 = vmul.f32 %v1557_v61, %v2508_v14 }
 0xedb   :  { %v1559_v62 = vadd.f32 1e-05, %v1558_v11 }
 0xedd   :  { %2440 = vrsqrt.f32 %v1559_v62  ;;  %vm1566_vm7 = vweird.f32 %v1559_v62 }
 0xee3   :  { %v2441_v63 = vpop.eup %2440 }
 0xee4   :  { %v1561_v0 = vmul.f32 %v2441_v63, %v1559_v62  ;;  %vm1567_vm6 = vweird.f32 %v2441_v63 }
 0xee5   :  { %vm1568_vm8 = vmor %vm1566_vm7, %vm1567_vm6 }
 0xee6   :  { %v1562_v35 = vmul.f32 %v2441_v63, %v1561_v0 }
 0xee8   :  { %v1563_v1 = vmul.f32 0.5, %v1562_v35 }
 0xeea   :  { %v1564_v2 = vsub.f32 1.5, %v1563_v1 }
 0xeec   :  { %v1565_v5 = vmul.f32 %v2441_v63, %v1564_v2 }
 0xeee   :  { %v1569_v14 = vsel %vm1568_vm8, %v2441_v63, %v1565_v5 }
 0xeef   :  { %v1570_v20 = vmul.f32 %v1569_v14, %v1553_v38  ;;  %v2489_v38 = vmov 32.0  }
 0xef1   :  { %v1571_v8 = vmul.f32 %v2454_v7, %v1570_v20 }
 0xef3   :  { %v1572_v12 = vadd.f32 %v2455_v10, %v1571_v8  ;;  %v2336_v8 = vld [vmem:[%s1820_s24 + $0x8] sm:$0xff]  ;;  %v2335_v10 = vld [vmem:[%s1820_s24] sm:$0xff] }
 0xef4   :  { %1777 = vmatpush.bf16.msrb.mxu2 %v2336_v8 }
 0xef5   :  { %v1574_v13 = vmul.f32 0.70710677, %v1572_v12  ;;  %v1573_v53 = vmul.f32 0.5, %v1572_v12 }
 0xef7   :  { %v1577_v15 = vand.u32 2147483647, %v1574_v13  ;;  %vm1575_vm13 = vcmp.ge.f32.partialorder %v1574_v13, 0.0 }
 0xef8   :  { %v1576_v51 = vsel %vm1575_vm13, 1.0, %v2463_v4  ;;  %1778 = vmatpush.bf16.msrb.mxu2 %v2335_v10 }
 0xef9   :  { %v1578_v16 = vmul.f32 0.3275911, %v1577_v15  ;;  %v1604_v33 = vmul.f32 %v1577_v15, %v1577_v15  ;;  %v2399_v15 = vld [vmem:[%s2840_s6] ss:$0 sm:$0xff] }
 0xefb   :  { %v1579_v18 = vadd.f32 1.0, %v1578_v16  ;;  %v1605_v41 = vsub.f32 0.0, %v1604_v33 }
 0xefd   :  { %2442 = vrcp.f32 %v1579_v18  ;;  %v1591_v23 = vand.u32 2147483648, %v1579_v18  ;;  %v1589_v29 = vand.u32 2147483647, %v1579_v18  ;;  %vm1585_vm10 = vweird.f32 %v1579_v18 }
 0xefe   :  { %v1606_v44 = vmul.f32 1.442695, %v1605_v41 }
 0xeff   :  { %v1592_v32 = vor.u32 1.1754944e-38, %v1591_v23  ;;  %vm1590_vm12 = vcmp.eq.f32.partialorder %v1589_v29, 8.507059e+37 }
 0xf00   :  { %2444 = vpow2.f32 %v1606_v44 }
 0xf01   :  { %2446 = vrcp.f32 %v2489_v38 }
 0xf03   :  { %v2443_v19 = vpop.eup %2442 }
 0xf04   :  { %v1581_v21 = vmul.f32 %v2443_v19, %v1579_v18  ;;  %vm1586_vm9 = vweird.f32 %v2443_v19  ;;  %v2400_v18 = vld [vmem:[%s2845_s13] ss:$0 sm:$0xff] }
 0xf05   :  { %vm1587_vm11 = vmor %vm1585_vm10, %vm1586_vm9 }
 0xf06   :  { %v1582_v22 = vsub.f32 1.0, %v1581_v21  ;;  %v2445_v49 = vpop.eup %2444 }
 0xf07   :  { %v2447_v59 = vpop.eup %2446 }
 0xf08   :  { %v1583_v28 = vmul.f32 %v2443_v19, %v1582_v22  ;;  %v1674_v60 = vmul.f32 32.0, %v2447_v59 }
 0xf0a   :  { %v1584_v30 = vadd.f32 %v2443_v19, %v1583_v28  ;;  %v1675_v61 = vsub.f32 1.0, %v1674_v60 }
 0xf0c   :  { %v1588_v31 = vsel %vm1587_vm11, %v2443_v19, %v1584_v30  ;;  %v1676_v11 = vmul.f32 %v2447_v59, %v1675_v61 }
 0xf0d   :  { %v1593_v34 = vsel %vm1590_vm12, %v1592_v32, %v1588_v31 }
 0xf0e   :  { %v1595_v39 = vmul.f32 1.0614054, %v1593_v34  ;;  %v1677_v62 = vadd.f32 %v2447_v59, %v1676_v11 }
 0xf10   :  { %v1596_v40 = vadd.f32 -1.4531521, %v1595_v39 }
 0xf12   :  { %v1597_v43 = vmul.f32 %v1596_v40, %v1593_v34 }
 0xf14   :  { %v1598_v42 = vadd.f32 1.4214138, %v1597_v43 }
 0xf16   :  { %v1599_v17 = vmul.f32 %v1598_v42, %v1593_v34 }
 0xf18   :  { %v1600_v45 = vadd.f32 -0.28449672, %v1599_v17 }
 0xf1a   :  { %v1601_v46 = vmul.f32 %v1600_v45, %v1593_v34 }
 0xf1c   :  { %v1602_v47 = vadd.f32 0.2548296, %v1601_v46 }
 0xf1e   :  { %v1603_v48 = vmul.f32 %v1602_v47, %v1593_v34 }
 0xf20   :  { %v1608_v26 = vmul.f32 %v2445_v49, %v1603_v48 }
 0xf22   :  { %v1609_v50 = vsub.f32 1.0, %v1608_v26 }
 0xf24   :  { %v1610_v27 = vmul.f32 %v1609_v50, %v1576_v51 }
 0xf26   :  { %v1611_v54 = vadd.f32 1.0, %v1610_v27 }
 0xf28   :  { %v1612_v55 = vmul.f32 %v1611_v54, %v1573_v53 }
 0xf2a   :  { %v1613_v56 = vadd.f32 %v1612_v55, %v2814_v52 }
 0xf2c   :  { %v1622_v24 = vpack.c.bf16 %v1613_v56, %v1613_v56 }
 0xf2e   :  { %2240 = vmatmul.msk.bf16.vlgmr.msrb.gmra.mxu1 %vm176_vm1, %v1622_v24  ;;  %vm1678_vm1 = vweird.f32 %v2447_v59 }
 0xf2f   :  { %v1679_v63 = vsel %vm1678_vm1, %v2447_v59, %v1677_v62  ;;  %v2401_v59 = vld [vmem:[%s2852_s18] ss:$0 sm:$0xff] }
 0xfab   :  { %v1663_v37 = vpop.f32.mrf.mxu1 }
 0xfac   :  { %v1664_v57 = vadd.f32 %v2398_v25, %v1663_v37 }
 0xfae   :  { %v1670_v52 = vsel %vm1669_vm14, %v1664_v57, 0.0 }
 0xfaf   :  { %1671 = vadd.xlane.f32.xlu2 %v1670_v52 }
 0xfb3   :  { %v1665_v58 = vpop.f32.mrf.mxu1 }
0x1022   :  { %v1672_v0 = vpop.xlane.xlu2 %1671 }
0x1023   :  { %v1680_v35 = vmul.f32 %v1679_v63, %v1672_v0 }
0x1025   :  { %v1681_v1 = vsub.f32 %v1664_v57, %v1680_v35 }
0x1027   :  { %v1682_v36 = vmul.f32 %v1681_v1, %v1681_v1 }
0x1029   :  { %v1683_v2 = vsel %vm1669_vm14, %v1682_v36, 0.0 }
0x102a   :  { %1684 = vadd.xlane.f32.xlu0 %v1683_v2 }
0x109d   :  { %v1685_v3 = vpop.xlane.xlu0 %1684 }
0x109e   :  { %v1686_v5 = vmul.f32 %v1685_v3, %v1679_v63 }
0x10a0   :  { %v1687_v14 = vadd.f32 1e-05, %v1686_v5 }
0x10a2   :  { %2448 = vrsqrt.f32 %v1687_v14  ;;  %vm1694_vm0 = vweird.f32 %v1687_v14 }
0x10a8   :  { %v2449_v6 = vpop.eup %2448 }
0x10a9   :  { %v1689_v20 = vmul.f32 %v2449_v6, %v1687_v14  ;;  %vm1695_vm15 = vweird.f32 %v2449_v6 }
0x10aa   :  { %vm1696_vm2 = vmor %vm1694_vm0, %vm1695_vm15 }
0x10ab   :  { %v1690_v7 = vmul.f32 %v2449_v6, %v1689_v20 }
0x10ad   :  { %v1691_v9 = vmul.f32 0.5, %v1690_v7 }
0x10af   :  { %v1692_v12 = vsub.f32 1.5, %v1691_v9 }
0x10b1   :  { %v1693_v13 = vmul.f32 %v2449_v6, %v1692_v12 }
0x10b3   :  { %v1697_v16 = vsel %vm1696_vm2, %v2449_v6, %v1693_v13 }
0x10b4   :  { %v1698_v19 = vmul.f32 %v1697_v16, %v1681_v1 }
0x10b6   :  { %v1702_v21 = vmul.f32 %v2399_v15, %v1698_v19 }
0x10b8   :  { %v1706_v22 = vadd.f32 %v2400_v18, %v1702_v21 }
0x10ba   :  { %v1708_v23 = vmul.f32 0.70710677, %v1706_v22  ;;  %v1707_v57 = vmul.f32 0.5, %v1706_v22 }
0x10bc   :  { %v1711_v28 = vand.u32 2147483647, %v1708_v23  ;;  %vm1709_vm7 = vcmp.ge.f32.partialorder %v1708_v23, 0.0 }
0x10bd   :  { %v1710_v25 = vsel %vm1709_vm7, 1.0, %v2463_v4 }
0x10be   :  { %v1712_v29 = vmul.f32 0.3275911, %v1711_v28  ;;  %v1738_v44 = vmul.f32 %v1711_v28, %v1711_v28 }
0x10c0   :  { %v1713_v30 = vadd.f32 1.0, %v1712_v29  ;;  %v1739_v47 = vsub.f32 0.0, %v1738_v44 }
0x10c2   :  { %2450 = vrcp.f32 %v1713_v30  ;;  %v1725_v34 = vand.u32 2147483648, %v1713_v30  ;;  %v1723_v40 = vand.u32 2147483647, %v1713_v30  ;;  %vm1719_vm4 = vweird.f32 %v1713_v30 }
0x10c3   :  { %v1740_v26 = vmul.f32 1.442695, %v1739_v47 }
0x10c4   :  { %v1726_v43 = vor.u32 1.1754944e-38, %v1725_v34  ;;  %vm1724_vm6 = vcmp.eq.f32.partialorder %v1723_v40, 8.507059e+37 }
0x10c5   :  { %2452 = vpow2.f32 %v1740_v26 }
0x10c8   :  { %v2451_v32 = vpop.eup %2450 }
0x10c9   :  { %v1715_v31 = vmul.f32 %v2451_v32, %v1713_v30  ;;  %vm1720_vm3 = vweird.f32 %v2451_v32 }
0x10ca   :  { %vm1721_vm5 = vmor %vm1719_vm4, %vm1720_vm3 }
0x10cb   :  { %v1716_v33 = vsub.f32 1.0, %v1715_v31  ;;  %v2453_v55 = vpop.eup %2452 }
0x10cd   :  { %v1717_v39 = vmul.f32 %v2451_v32, %v1716_v33 }
0x10cf   :  { %v1718_v41 = vadd.f32 %v2451_v32, %v1717_v39 }
0x10d1   :  { %v1722_v42 = vsel %vm1721_vm5, %v2451_v32, %v1718_v41 }
0x10d2   :  { %v1727_v17 = vsel %vm1724_vm6, %v1726_v43, %v1722_v42 }
0x10d3   :  { %v1729_v45 = vmul.f32 1.0614054, %v1727_v17 }
0x10d5   :  { %v1730_v46 = vadd.f32 -1.4531521, %v1729_v45 }
0x10d7   :  { %v1731_v48 = vmul.f32 %v1730_v46, %v1727_v17 }
0x10d9   :  { %v1732_v49 = vadd.f32 1.4214138, %v1731_v48 }
0x10db   :  { %v1733_v50 = vmul.f32 %v1732_v49, %v1727_v17 }
0x10dd   :  { %v1734_v51 = vadd.f32 -0.28449672, %v1733_v50 }
0x10df   :  { %v1735_v27 = vmul.f32 %v1734_v51, %v1727_v17 }
0x10e1   :  { %v1736_v53 = vadd.f32 0.2548296, %v1735_v27 }
0x10e3   :  { %v1737_v54 = vmul.f32 %v1736_v53, %v1727_v17 }
0x10e5   :  { %v1742_v56 = vmul.f32 %v2453_v55, %v1737_v54 }
0x10e7   :  { %v1743_v24 = vsub.f32 1.0, %v1742_v56 }
0x10e9   :  { %v1744_v37 = vmul.f32 %v1743_v24, %v1710_v25 }
0x10eb   :  { %v1745_v52 = vadd.f32 1.0, %v1744_v37 }
0x10ed   :  { %v1746_v58 = vmul.f32 %v1745_v52, %v1707_v57 }
0x10ef   :  { %v1751_v38 = vpack.c.bf16 %v1746_v58, %v1746_v58 }
0x10f1   :  { %2249 = vmatmul.msk.bf16.vlgmr.msrb.gmra.mxu2 %vm1669_vm14, %v1751_v38 }
0x1174   :  { %v1780_v60 = vpop.f32.mrf.mxu2 }
0x1175   :  { %v1781_v61 = vadd.f32 %v2401_v59, %v1780_v60 }
0x1177   :  { %1784 = vst [vmem:[%s1822_s29] sm:$0xff] %v1781_v61 }
0x117c   :  { %v1782_v11 = vpop.f32.mrf.mxu2 }

</bundles_post_ra>
